<compile_context>
chip_gen: v7x
topology: tpu7x:2x2x1
jax: 0.10.0
libtpu: 0.0.40
codegen_flags: <defaults>
</compile_context>

<pallas_src>
import math

import jax
import jax.numpy as jnp
from jax import lax
from jax.experimental import pallas as pl
from jax.experimental.pallas import tpu as pltpu

# ------------------------- problem sizes (small) -----------------------------
B = 2        # batch
S = 8        # sequence length
D = 32       # hidden size ("size" in EncoderLayer)
H = 4        # attention heads
DK = D // H
DFF = 64     # feed-forward inner dim
EPS = 1e-12  # matches EncoderLayer's LayerNorm(size, eps=1e-12)

# bf16 MXU operands (keep accumulation & all elementwise math in f32).  Off by
# default so the correctness check against the f32 reference stays tight; flip
# on when D/DFF/S scale (dominant lever on v6e/v7x 256x256 bf16 MXUs).
USE_BF16_MATMUL = False


def _c(a):
    """Cast an MXU operand to bf16 when the fast-matmul path is enabled."""
    return a.astype(jnp.bfloat16) if USE_BF16_MATMUL else a


def _mm(a, b):
    return jnp.dot(_c(a), _c(b), preferred_element_type=jnp.float32)


def _layernorm(v, w, b, eps):
    # TF-style layernorm (epsilon inside the sqrt), matches the PyTorch module.
    mean = jnp.mean(v, axis=-1, keepdims=True)
    var = jnp.mean((v - mean) ** 2, axis=-1, keepdims=True)
    return w * ((v - mean) * lax.rsqrt(var + eps)) + b


# ------------------------------ kernel ---------------------------------------
def encoder_layer_kernel(x_ref, wqkv_ref, bqkv_ref, wo_ref, w1_ref, w2_ref,
                         dvec_ref, b1_ref, o_ref):
    BB, S_, D_ = x_ref.shape          # full batch handled in this single step
    dk = D_ // H
    N = BB * S_

    # Flatten (BB, S, D) -> (BB*S, D): leading-dim collapse only (free).
    x = x_ref[...].astype(jnp.float32).reshape(N, D_)

    vecs = dvec_ref[...]              # (6, D): all remaining D-sized vectors
    ln1_w, ln1_b = vecs[0], vecs[1]
    ln2_w, ln2_b = vecs[2], vecs[3]
    bo, b2 = vecs[4], vecs[5]

    # ---- res = norm_in(x) ----
    res = _layernorm(x, ln1_w, ln1_b, EPS)

    # ---- fused QKV projection + single fused bias add ----
    qkv = _mm(res, wqkv_ref[...]) + bqkv_ref[...]           # (N, 3D)
    q = qkv[:, 0 * D_:1 * D_]
    k = qkv[:, 1 * D_:2 * D_]
    v = qkv[:, 2 * D_:3 * D_]

    # ---- multi-head attention: one batched contraction pair over (B*H) ----
    def heads(m):                      # (N, D) -> (BB*H, S, dk)
        return m.reshape(BB, S_, H, dk).transpose(0, 2, 1, 3).reshape(BB * H, S_, dk)

    qh, kh, vh = heads(q), heads(k), heads(v)

    scale = 1.0 / math.sqrt(dk)
    s = jnp.einsum("nqd,nkd->nqk", _c(qh), _c(kh),
                   preferred_element_type=jnp.float32) * scale    # (BB*H, S, S)
    s = s - jnp.max(s, axis=-1, keepdims=True)
    p = jnp.exp(s)
    p = p * pl.reciprocal(jnp.sum(p, axis=-1, keepdims=True), approx=True)
    c = jnp.einsum("nqk,nkd->nqd", _c(p), _c(vh),
                   preferred_element_type=jnp.float32)            # (BB*H, S, dk)
    ctx = c.reshape(BB, H, S_, dk).transpose(0, 2, 1, 3).reshape(N, D_)

    attn = _mm(ctx, wo_ref[...]) + bo

    # ---- residual ----
    x = x + attn

    # ---- feed-forward on norm_out(x): Linear -> ReLU -> Linear ----
    res2 = _layernorm(x, ln2_w, ln2_b, EPS)
    h1 = jnp.maximum(_mm(res2, w1_ref[...]) + b1_ref[...], 0.0)   # (N, DFF)
    ff = _mm(h1, w2_ref[...]) + b2

    # ---- residual + store ----
    o_ref[...] = (x + ff).reshape(BB, S_, D_).astype(o_ref.dtype)


# ------------------------------ wrapper --------------------------------------
def pack_params(params):
    """One-time packing of the 16 tiny parameter arrays into 7 kernel inputs.

    Hoisted out of the per-call wrapper so the concat/stack/reshape XLA ops are
    not paid on every forward call.
    """
    (ln1_w, ln1_b, wq, bq, wk, bk, wv, bv, wo, bo,
     ln2_w, ln2_b, w1, b1, w2, b2) = params
    wqkv = jnp.concatenate([wq, wk, wv], axis=1)                    # (D, 3D)
    bqkv = jnp.concatenate([bq, bk, bv]).reshape(1, 3 * D)          # (1, 3D)
    dvecs = jnp.stack([ln1_w, ln1_b, ln2_w, ln2_b, bo, b2], 0)      # (6, D)
    b1m = b1.reshape(1, DFF)                                        # (1, DFF)
    return (wqkv, bqkv, wo, w1, w2, dvecs, b1m)


@jax.jit
def encoder_layer(x, packed):
    # Single grid step on every generation: at this size, splitting B=2 across
    # v7x's two TensorCores would add per-step overhead and duplicate the
    # parameter DMAs with no compute win, so no device sniffing is needed.
    in_specs = [pl.BlockSpec((B, S, D), lambda i: (0, 0, 0))]
    in_specs += [pl.BlockSpec(p.shape, lambda i, nd=p.ndim: (0,) * nd)
                 for p in packed]
    out_spec = pl.BlockSpec((B, S, D), lambda i: (0, 0, 0))

    return pl.pallas_call(
        encoder_layer_kernel,
        out_shape=jax.ShapeDtypeStruct((B, S, D), x.dtype),
        grid=(1,),
        in_specs=in_specs,
        out_specs=out_spec,
        compiler_params=pltpu.CompilerParams(
            dimension_semantics=("arbitrary",)),
    )(x, *packed)


# --------------------------- pure-JAX reference -------------------------------
def encoder_layer_ref(x, params):
    (ln1_w, ln1_b, wq, bq, wk, bk, wv, bv, wo, bo,
     ln2_w, ln2_b, w1, b1, w2, b2) = params

    def ln(v, w, b):
        m = jnp.mean(v, -1, keepdims=True)
        var = jnp.mean((v - m) ** 2, -1, keepdims=True)
        return w * ((v - m) / jnp.sqrt(var + EPS)) + b

    r = ln(x, ln1_w, ln1_b)
    q = r @ wq + bq
    k = r @ wk + bk
    v = r @ wv + bv
    q = q.reshape(B, S, H, DK).transpose(0, 2, 1, 3)
    k = k.reshape(B, S, H, DK).transpose(0, 2, 1, 3)
    v = v.reshape(B, S, H, DK).transpose(0, 2, 1, 3)
    sc = jnp.einsum("bhqd,bhkd->bhqk", q, k) / math.sqrt(DK)
    p = jax.nn.softmax(sc, axis=-1)
    a = jnp.einsum("bhqk,bhkd->bhqd", p, v).transpose(0, 2, 1, 3).reshape(B, S, D)
    a = a @ wo + bo
    x = x + a
    r2 = ln(x, ln2_w, ln2_b)
    ff = jnp.maximum(r2 @ w1 + b1, 0.0) @ w2 + b2
    return x + ff


# ------------------------------ main ------------------------------------------
if __name__ == "__main__":
    key = jax.random.PRNGKey(0)
    ks = jax.random.split(key, 8)

    x = jax.random.normal(ks[0], (B, S, D), dtype=jnp.float32)

    def lin(kw, fan_in, shape_w, shape_b):
        bound = 1.0 / math.sqrt(fan_in)
        kw1, kw2 = jax.random.split(kw)
        w = jax.random.uniform(kw1, shape_w, jnp.float32, -bound, bound)
        b = jax.random.uniform(kw2, shape_b, jnp.float32, -bound, bound)
        return w, b

    wq, bq = lin(ks[1], D, (D, D), (D,))
    wk, bk = lin(ks[2], D, (D, D), (D,))
    wv, bv = lin(ks[3], D, (D, D), (D,))
    wo, bo = lin(ks[4], D, (D, D), (D,))
    w1, b1 = lin(ks[5], D, (D, DFF), (DFF,))
    w2, b2 = lin(ks[6], DFF, (DFF, D), (D,))

    ln1_w = jnp.ones((D,), jnp.float32)
    ln1_b = jnp.zeros((D,), jnp.float32)
    ln2_w = jnp.ones((D,), jnp.float32)
    ln2_b = jnp.zeros((D,), jnp.float32)

    params = (ln1_w, ln1_b, wq, bq, wk, bk, wv, bv, wo, bo,
              ln2_w, ln2_b, w1, b1, w2, b2)

    packed = pack_params(params)          # one-time packing, not per forward
    packed = jax.block_until_ready(packed)

    out = encoder_layer(x, packed)
    out = jax.block_until_ready(out)

    ref = encoder_layer_ref(x, params)
    # Tolerance accounts for the approximate (EUP) reciprocal in the softmax.
    assert jnp.allclose(out, ref, atol=2e-3, rtol=2e-3), "mismatch vs JAX reference"

    print("KERNEL_OK")
</pallas_src>

<mosaic_0001>
module attributes {stable_mosaic.version = 11 : i64} {
  func.func @encoder_layer_kernel(%arg0: i32, %arg1: memref<2x8x32xf32, #tpu.memory_space<vmem>>, %arg2: memref<32x96xf32, #tpu.memory_space<vmem>>, %arg3: memref<1x96xf32, #tpu.memory_space<vmem>>, %arg4: memref<32x32xf32, #tpu.memory_space<vmem>>, %arg5: memref<32x64xf32, #tpu.memory_space<vmem>>, %arg6: memref<64x32xf32, #tpu.memory_space<vmem>>, %arg7: memref<6x32xf32, #tpu.memory_space<vmem>>, %arg8: memref<1x64xf32, #tpu.memory_space<vmem>>, %arg9: memref<2x8x32xf32, #tpu.memory_space<vmem>>) attributes {dimension_semantics = [#tpu.dimension_semantics<arbitrary>], iteration_bounds = array<i64: 1>, scalar_prefetch = 0 : i64, scratch_operands = 0 : i64, tpu.core_type = #tpu.core_type<tc>, window_params = [{pipeline_mode = #tpu.pipeline_mode<synchronous>, transform_indices = @transform_0, window_bounds = array<i64: 2, 8, 32>}, {pipeline_mode = #tpu.pipeline_mode<synchronous>, transform_indices = @transform_1, window_bounds = array<i64: 32, 96>}, {pipeline_mode = #tpu.pipeline_mode<synchronous>, transform_indices = @transform_2, window_bounds = array<i64: 1, 96>}, {pipeline_mode = #tpu.pipeline_mode<synchronous>, transform_indices = @transform_3, window_bounds = array<i64: 32, 32>}, {pipeline_mode = #tpu.pipeline_mode<synchronous>, transform_indices = @transform_4, window_bounds = array<i64: 32, 64>}, {pipeline_mode = #tpu.pipeline_mode<synchronous>, transform_indices = @transform_5, window_bounds = array<i64: 64, 32>}, {pipeline_mode = #tpu.pipeline_mode<synchronous>, transform_indices = @transform_6, window_bounds = array<i64: 6, 32>}, {pipeline_mode = #tpu.pipeline_mode<synchronous>, transform_indices = @transform_7, window_bounds = array<i64: 1, 64>}, {pipeline_mode = #tpu.pipeline_mode<synchronous>, transform_indices = @transform_8, window_bounds = array<i64: 2, 8, 32>}]} {
    %c0 = arith.constant 0 : index
    %c0_0 = arith.constant 0 : index
    %c0_1 = arith.constant 0 : index
    %0 = vector.load %arg1[%c0, %c0_0, %c0_1] : memref<2x8x32xf32, #tpu.memory_space<vmem>>, vector<2x8x32xf32>
    %1 = vector.shape_cast %0 : vector<2x8x32xf32> to vector<16x32xf32>
    %c0_2 = arith.constant 0 : index
    %c0_3 = arith.constant 0 : index
    %2 = vector.load %arg7[%c0_2, %c0_3] : memref<6x32xf32, #tpu.memory_space<vmem>>, vector<6x32xf32>
    %3 = vector.extract_strided_slice %2 {offsets = [0, 0], sizes = [1, 32], strides = [1, 1]} : vector<6x32xf32> to vector<1x32xf32>
    %4 = vector.shape_cast %3 : vector<1x32xf32> to vector<32xf32>
    %5 = vector.extract_strided_slice %2 {offsets = [1, 0], sizes = [1, 32], strides = [1, 1]} : vector<6x32xf32> to vector<1x32xf32>
    %6 = vector.shape_cast %5 : vector<1x32xf32> to vector<32xf32>
    %7 = vector.extract_strided_slice %2 {offsets = [2, 0], sizes = [1, 32], strides = [1, 1]} : vector<6x32xf32> to vector<1x32xf32>
    %8 = vector.shape_cast %7 : vector<1x32xf32> to vector<32xf32>
    %9 = vector.extract_strided_slice %2 {offsets = [3, 0], sizes = [1, 32], strides = [1, 1]} : vector<6x32xf32> to vector<1x32xf32>
    %10 = vector.shape_cast %9 : vector<1x32xf32> to vector<32xf32>
    %11 = vector.extract_strided_slice %2 {offsets = [4, 0], sizes = [1, 32], strides = [1, 1]} : vector<6x32xf32> to vector<1x32xf32>
    %12 = vector.shape_cast %11 : vector<1x32xf32> to vector<32xf32>
    %13 = vector.extract_strided_slice %2 {offsets = [5, 0], sizes = [1, 32], strides = [1, 1]} : vector<6x32xf32> to vector<1x32xf32>
    %14 = vector.shape_cast %13 : vector<1x32xf32> to vector<32xf32>
    %cst = arith.constant dense<0.000000e+00> : vector<16xf32>
    %15 = vector.multi_reduction <add>, %1, %cst [1] : vector<16x32xf32> to vector<16xf32>
    %16 = vector.shape_cast %15 : vector<16xf32> to vector<16x1xf32>
    %cst_4 = arith.constant 3.200000e+01 : f32
    %17 = vector.broadcast %cst_4 : f32 to vector<16x1xf32>
    %18 = arith.divf %16, %17 : vector<16x1xf32>
    %19 = vector.broadcast %18 : vector<16x1xf32> to vector<16x32xf32>
    %20 = arith.subf %1, %19 : vector<16x32xf32>
    %21 = arith.mulf %20, %20 : vector<16x32xf32>
    %cst_5 = arith.constant dense<0.000000e+00> : vector<16xf32>
    %22 = vector.multi_reduction <add>, %21, %cst_5 [1] : vector<16x32xf32> to vector<16xf32>
    %23 = vector.shape_cast %22 : vector<16xf32> to vector<16x1xf32>
    %cst_6 = arith.constant 3.200000e+01 : f32
    %24 = vector.broadcast %cst_6 : f32 to vector<16x1xf32>
    %25 = arith.divf %23, %24 : vector<16x1xf32>
    %26 = vector.broadcast %18 : vector<16x1xf32> to vector<16x32xf32>
    %27 = arith.subf %1, %26 : vector<16x32xf32>
    %cst_7 = arith.constant 9.99999996E-13 : f32
    %28 = vector.broadcast %cst_7 : f32 to vector<16x1xf32>
    %29 = arith.addf %25, %28 : vector<16x1xf32>
    %30 = math.rsqrt %29 : vector<16x1xf32>
    %31 = vector.broadcast %30 : vector<16x1xf32> to vector<16x32xf32>
    %32 = arith.mulf %27, %31 : vector<16x32xf32>
    %33 = vector.shape_cast %4 : vector<32xf32> to vector<1x32xf32>
    %34 = vector.broadcast %33 : vector<1x32xf32> to vector<16x32xf32>
    %35 = arith.mulf %34, %32 : vector<16x32xf32>
    %36 = vector.shape_cast %6 : vector<32xf32> to vector<1x32xf32>
    %37 = vector.broadcast %36 : vector<1x32xf32> to vector<16x32xf32>
    %38 = arith.addf %35, %37 : vector<16x32xf32>
    %c0_8 = arith.constant 0 : index
    %c0_9 = arith.constant 0 : index
    %39 = vector.load %arg2[%c0_8, %c0_9] : memref<32x96xf32, #tpu.memory_space<vmem>>, vector<32x96xf32>
    %cst_10 = arith.constant dense<0.000000e+00> : vector<16x96xf32>
    %40 = tpu.matmul %38, %39, %cst_10 {dimension_numbers = #tpu.dot_dimension_numbers<[1], [0], [0], [1], [0, 0, 1, 1], [], []>} : vector<16x32xf32>, vector<32x96xf32>, vector<16x96xf32> -> vector<16x96xf32>
    %c0_11 = arith.constant 0 : index
    %c0_12 = arith.constant 0 : index
    %41 = vector.load %arg3[%c0_11, %c0_12] : memref<1x96xf32, #tpu.memory_space<vmem>>, vector<1x96xf32>
    %42 = vector.broadcast %41 : vector<1x96xf32> to vector<16x96xf32>
    %43 = arith.addf %40, %42 : vector<16x96xf32>
    %44 = vector.extract_strided_slice %43 {offsets = [0, 0], sizes = [16, 32], strides = [1, 1]} : vector<16x96xf32> to vector<16x32xf32>
    %45 = vector.extract_strided_slice %43 {offsets = [0, 32], sizes = [16, 32], strides = [1, 1]} : vector<16x96xf32> to vector<16x32xf32>
    %46 = vector.extract_strided_slice %43 {offsets = [0, 64], sizes = [16, 32], strides = [1, 1]} : vector<16x96xf32> to vector<16x32xf32>
    %47 = vector.shape_cast %44 : vector<16x32xf32> to vector<2x8x4x8xf32>
    %48 = tpu.transpose %47, [0, 2, 1, 3] : vector<2x8x4x8xf32> -> vector<2x4x8x8xf32>
    %49 = vector.shape_cast %48 : vector<2x4x8x8xf32> to vector<8x8x8xf32>
    %50 = vector.shape_cast %45 : vector<16x32xf32> to vector<2x8x4x8xf32>
    %51 = tpu.transpose %50, [0, 2, 1, 3] : vector<2x8x4x8xf32> -> vector<2x4x8x8xf32>
    %52 = vector.shape_cast %51 : vector<2x4x8x8xf32> to vector<8x8x8xf32>
    %53 = vector.shape_cast %46 : vector<16x32xf32> to vector<2x8x4x8xf32>
    %54 = tpu.transpose %53, [0, 2, 1, 3] : vector<2x8x4x8xf32> -> vector<2x4x8x8xf32>
    %55 = vector.shape_cast %54 : vector<2x4x8x8xf32> to vector<8x8x8xf32>
    "tpu.trace_start"() <{level = 10 : i32, message = "nqd,nkd->nqk"}> : () -> ()
    %cst_13 = arith.constant dense<0.000000e+00> : vector<8x8x8xf32>
    %56 = tpu.matmul %49, %52, %cst_13 {dimension_numbers = #tpu.dot_dimension_numbers<[2], [2], [1], [1], [0, 0, 0, 1, 1, 1], [0], [0]>} : vector<8x8x8xf32>, vector<8x8x8xf32>, vector<8x8x8xf32> -> vector<8x8x8xf32>
    "tpu.trace_stop"() : () -> ()
    %cst_14 = arith.constant 0.353553385 : f32
    %57 = vector.broadcast %cst_14 : f32 to vector<8x8x8xf32>
    %58 = arith.mulf %56, %57 : vector<8x8x8xf32>
    %cst_15 = arith.constant dense<0xFF800000> : vector<8x8xf32>
    %59 = vector.multi_reduction <maximumf>, %58, %cst_15 [2] : vector<8x8x8xf32> to vector<8x8xf32>
    %60 = vector.shape_cast %59 : vector<8x8xf32> to vector<8x8x1xf32>
    %61 = vector.broadcast %60 : vector<8x8x1xf32> to vector<8x8x8xf32>
    %62 = arith.subf %58, %61 : vector<8x8x8xf32>
    %63 = math.exp %62 : vector<8x8x8xf32>
    %cst_16 = arith.constant dense<0.000000e+00> : vector<8x8xf32>
    %64 = vector.multi_reduction <add>, %63, %cst_16 [2] : vector<8x8x8xf32> to vector<8x8xf32>
    %65 = vector.shape_cast %64 : vector<8x8xf32> to vector<8x8x1xf32>
    %66 = tpu.reciprocal %65 {approx = true} : vector<8x8x1xf32> -> vector<8x8x1xf32>
    %67 = vector.broadcast %66 : vector<8x8x1xf32> to vector<8x8x8xf32>
    %68 = arith.mulf %63, %67 : vector<8x8x8xf32>
    "tpu.trace_start"() <{level = 10 : i32, message = "nqk,nkd->nqd"}> : () -> ()
    %cst_17 = arith.constant dense<0.000000e+00> : vector<8x8x8xf32>
    %69 = tpu.matmul %68, %55, %cst_17 {dimension_numbers = #tpu.dot_dimension_numbers<[2], [1], [1], [2], [0, 0, 0, 1, 1, 2], [0], [0]>} : vector<8x8x8xf32>, vector<8x8x8xf32>, vector<8x8x8xf32> -> vector<8x8x8xf32>
    "tpu.trace_stop"() : () -> ()
    %70 = vector.shape_cast %69 : vector<8x8x8xf32> to vector<2x4x8x8xf32>
    %71 = tpu.transpose %70, [0, 2, 1, 3] : vector<2x4x8x8xf32> -> vector<2x8x4x8xf32>
    %72 = vector.shape_cast %71 : vector<2x8x4x8xf32> to vector<16x32xf32>
    %c0_18 = arith.constant 0 : index
    %c0_19 = arith.constant 0 : index
    %73 = vector.load %arg4[%c0_18, %c0_19] : memref<32x32xf32, #tpu.memory_space<vmem>>, vector<32x32xf32>
    %cst_20 = arith.constant dense<0.000000e+00> : vector<16x32xf32>
    %74 = tpu.matmul %72, %73, %cst_20 {dimension_numbers = #tpu.dot_dimension_numbers<[1], [0], [0], [1], [0, 0, 1, 1], [], []>} : vector<16x32xf32>, vector<32x32xf32>, vector<16x32xf32> -> vector<16x32xf32>
    %75 = vector.shape_cast %12 : vector<32xf32> to vector<1x32xf32>
    %76 = vector.broadcast %75 : vector<1x32xf32> to vector<16x32xf32>
    %77 = arith.addf %74, %76 : vector<16x32xf32>
    %78 = arith.addf %1, %77 : vector<16x32xf32>
    %cst_21 = arith.constant dense<0.000000e+00> : vector<16xf32>
    %79 = vector.multi_reduction <add>, %78, %cst_21 [1] : vector<16x32xf32> to vector<16xf32>
    %80 = vector.shape_cast %79 : vector<16xf32> to vector<16x1xf32>
    %cst_22 = arith.constant 3.200000e+01 : f32
    %81 = vector.broadcast %cst_22 : f32 to vector<16x1xf32>
    %82 = arith.divf %80, %81 : vector<16x1xf32>
    %83 = vector.broadcast %82 : vector<16x1xf32> to vector<16x32xf32>
    %84 = arith.subf %78, %83 : vector<16x32xf32>
    %85 = arith.mulf %84, %84 : vector<16x32xf32>
    %cst_23 = arith.constant dense<0.000000e+00> : vector<16xf32>
    %86 = vector.multi_reduction <add>, %85, %cst_23 [1] : vector<16x32xf32> to vector<16xf32>
    %87 = vector.shape_cast %86 : vector<16xf32> to vector<16x1xf32>
    %cst_24 = arith.constant 3.200000e+01 : f32
    %88 = vector.broadcast %cst_24 : f32 to vector<16x1xf32>
    %89 = arith.divf %87, %88 : vector<16x1xf32>
    %90 = vector.broadcast %82 : vector<16x1xf32> to vector<16x32xf32>
    %91 = arith.subf %78, %90 : vector<16x32xf32>
    %cst_25 = arith.constant 9.99999996E-13 : f32
    %92 = vector.broadcast %cst_25 : f32 to vector<16x1xf32>
    %93 = arith.addf %89, %92 : vector<16x1xf32>
    %94 = math.rsqrt %93 : vector<16x1xf32>
    %95 = vector.broadcast %94 : vector<16x1xf32> to vector<16x32xf32>
    %96 = arith.mulf %91, %95 : vector<16x32xf32>
    %97 = vector.shape_cast %8 : vector<32xf32> to vector<1x32xf32>
    %98 = vector.broadcast %97 : vector<1x32xf32> to vector<16x32xf32>
    %99 = arith.mulf %98, %96 : vector<16x32xf32>
    %100 = vector.shape_cast %10 : vector<32xf32> to vector<1x32xf32>
    %101 = vector.broadcast %100 : vector<1x32xf32> to vector<16x32xf32>
    %102 = arith.addf %99, %101 : vector<16x32xf32>
    %c0_26 = arith.constant 0 : index
    %c0_27 = arith.constant 0 : index
    %103 = vector.load %arg5[%c0_26, %c0_27] : memref<32x64xf32, #tpu.memory_space<vmem>>, vector<32x64xf32>
    %cst_28 = arith.constant dense<0.000000e+00> : vector<16x64xf32>
    %104 = tpu.matmul %102, %103, %cst_28 {dimension_numbers = #tpu.dot_dimension_numbers<[1], [0], [0], [1], [0, 0, 1, 1], [], []>} : vector<16x32xf32>, vector<32x64xf32>, vector<16x64xf32> -> vector<16x64xf32>
    %c0_29 = arith.constant 0 : index
    %c0_30 = arith.constant 0 : index
    %105 = vector.load %arg8[%c0_29, %c0_30] : memref<1x64xf32, #tpu.memory_space<vmem>>, vector<1x64xf32>
    %106 = vector.broadcast %105 : vector<1x64xf32> to vector<16x64xf32>
    %107 = arith.addf %104, %106 : vector<16x64xf32>
    %cst_31 = arith.constant 0.000000e+00 : f32
    %108 = vector.broadcast %cst_31 : f32 to vector<16x64xf32>
    %109 = arith.maximumf %107, %108 : vector<16x64xf32>
    %c0_32 = arith.constant 0 : index
    %c0_33 = arith.constant 0 : index
    %110 = vector.load %arg6[%c0_32, %c0_33] : memref<64x32xf32, #tpu.memory_space<vmem>>, vector<64x32xf32>
    %cst_34 = arith.constant dense<0.000000e+00> : vector<16x32xf32>
    %111 = tpu.matmul %109, %110, %cst_34 {dimension_numbers = #tpu.dot_dimension_numbers<[1], [0], [0], [1], [0, 0, 1, 1], [], []>} : vector<16x64xf32>, vector<64x32xf32>, vector<16x32xf32> -> vector<16x32xf32>
    %112 = vector.shape_cast %14 : vector<32xf32> to vector<1x32xf32>
    %113 = vector.broadcast %112 : vector<1x32xf32> to vector<16x32xf32>
    %114 = arith.addf %111, %113 : vector<16x32xf32>
    %115 = arith.addf %78, %114 : vector<16x32xf32>
    %116 = vector.shape_cast %115 : vector<16x32xf32> to vector<2x8x32xf32>
    %c0_35 = arith.constant 0 : index
    %c0_36 = arith.constant 0 : index
    %c0_37 = arith.constant 0 : index
    %117 = vector.load %arg9[%c0_35, %c0_36, %c0_37] : memref<2x8x32xf32, #tpu.memory_space<vmem>>, vector<2x8x32xf32>
    tpu.vector_store %arg9[%c0_35, %c0_36, %c0_37], %116 {strides = array<i32>} : memref<2x8x32xf32, #tpu.memory_space<vmem>>, vector<2x8x32xf32>,
    return
  }
  func.func @transform_0(%arg0: i32) -> (i32, i32, i32) {
    %c0_i32 = arith.constant 0 : i32
    %c0_i32_0 = arith.constant 0 : i32
    %c0_i32_1 = arith.constant 0 : i32
    %c0_i32_2 = arith.constant 0 : i32
    return %c0_i32, %c0_i32_0, %c0_i32_1 : i32, i32, i32
  }
  func.func @transform_1(%arg0: i32) -> (i32, i32) {
    %c0_i32 = arith.constant 0 : i32
    %c0_i32_0 = arith.constant 0 : i32
    %c0_i32_1 = arith.constant 0 : i32
    return %c0_i32, %c0_i32_0 : i32, i32
  }
  func.func @transform_2(%arg0: i32) -> (i32, i32) {
    %c0_i32 = arith.constant 0 : i32
    %c0_i32_0 = arith.constant 0 : i32
    %c0_i32_1 = arith.constant 0 : i32
    return %c0_i32, %c0_i32_0 : i32, i32
  }
  func.func @transform_3(%arg0: i32) -> (i32, i32) {
    %c0_i32 = arith.constant 0 : i32
    %c0_i32_0 = arith.constant 0 : i32
    %c0_i32_1 = arith.constant 0 : i32
    return %c0_i32, %c0_i32_0 : i32, i32
  }
  func.func @transform_4(%arg0: i32) -> (i32, i32) {
    %c0_i32 = arith.constant 0 : i32
    %c0_i32_0 = arith.constant 0 : i32
    %c0_i32_1 = arith.constant 0 : i32
    return %c0_i32, %c0_i32_0 : i32, i32
  }
  func.func @transform_5(%arg0: i32) -> (i32, i32) {
    %c0_i32 = arith.constant 0 : i32
    %c0_i32_0 = arith.constant 0 : i32
    %c0_i32_1 = arith.constant 0 : i32
    return %c0_i32, %c0_i32_0 : i32, i32
  }
  func.func @transform_6(%arg0: i32) -> (i32, i32) {
    %c0_i32 = arith.constant 0 : i32
    %c0_i32_0 = arith.constant 0 : i32
    %c0_i32_1 = arith.constant 0 : i32
    return %c0_i32, %c0_i32_0 : i32, i32
  }
  func.func @transform_7(%arg0: i32) -> (i32, i32) {
    %c0_i32 = arith.constant 0 : i32
    %c0_i32_0 = arith.constant 0 : i32
    %c0_i32_1 = arith.constant 0 : i32
    return %c0_i32, %c0_i32_0 : i32, i32
  }
  func.func @transform_8(%arg0: i32) -> (i32, i32, i32) {
    %c0_i32 = arith.constant 0 : i32
    %c0_i32_0 = arith.constant 0 : i32
    %c0_i32_1 = arith.constant 0 : i32
    %c0_i32_2 = arith.constant 0 : i32
    return %c0_i32, %c0_i32_0, %c0_i32_1 : i32, i32, i32
  }
}

</mosaic_0001>

<bundles_post_ra>
// kernel: encoder_layer.1
= control target key start
LH: loop header
LB: loop body
LE: loop exit
PB: predicated region body
PF: predicated region fallthrough
CT: control target
= control target key end

     0   :  { %13 = vsyncpa [#allocation3], 0  ;;  %s3943_s0 = inlined_call_operand.hbm [shape: f32[2,8,32], index: 0, kind: input, shape index: {}]   ;;  %s3944_s1 = inlined_call_operand.vmem [shape: f32[32,96], index: 1, kind: input, shape index: {}]   ;;  %s3945_s2 = inlined_call_operand.vmem [shape: f32[1,96], index: 2, kind: input, shape index: {}]   ;;  %s3946_s3 = inlined_call_operand.vmem [shape: f32[32,32], index: 3, kind: input, shape index: {}]   ;;  %s3947_s4 = inlined_call_operand.vmem [shape: f32[32,64], index: 4, kind: input, shape index: {}]   ;;  %s3948_s5 = inlined_call_operand.vmem [shape: f32[64,32], index: 5, kind: input, shape index: {}]   ;;  %s3949_s6 = inlined_call_operand.vmem [shape: f32[6,32], index: 6, kind: input, shape index: {}]   ;;  %s3950_s7 = inlined_call_operand.vmem [shape: f32[1,64], index: 7, kind: input, shape index: {}]   ;;  %s3951_s8 = inlined_call_operand.hbm [shape: f32[2,8,32], index: 8, kind: output, shape index: {}]  }
   0x1   :  { %14 = vsyncpa [#allocation4], 0  ;;  %s3382_s27 = smov [#allocation2]   ;;  %s3334_s9 = scalar_lea.hbm %s3943_s0, 256 }
   0x2   :  { %s20_s28 = sshll.u32 %s3382_s27, 4  ;;  %p3335_p0 = scmp.ne.s32.totalorder %s3943_s0, %s3334_s9  ;;  %s21_s28 = int_to_ptr.vmem [resolvable:$true] %s20_s28 }
   0x3   :  { %p3338_p1 = scmp.lt.u32.totalorder %s3334_s9, %s3943_s0 }
   0x5   :  { %p3340_p2 = pnand %p3338_p1, %p3335_p0 }
   0x7   :  { %3343 = shalt.err (!%p3340_p2)
}
   0x8   :  { %s3344_s14 = scalar_lea.vmem %s21_s28, 256  ;;  %p3349_p4 = scmp.lt.s32.totalorder %s21_s28, %s21_s28 }
   0x9   :  { %p3345_p3 = scmp.ne.s32.totalorder %s21_s28, %s3344_s14  ;;  %p3350_p5 = scmp.lt.s32.totalorder %s3344_s14, %s3344_s14 }
   0xb   :  { %p3351_p6 = por %p3350_p5, %p3349_p4 }
   0xd   :  { %p3352_p7 = pnand %p3351_p6, %p3345_p3 }
   0xf   :  { %3355 = shalt.err (!%p3352_p7)
}
  0x10   :  { %s3383_s15 = smov 128   ;;  %s3384_s16 = smov 8  }
  0x11   :  { %26 = dma.hbm_to_vmem [thread:$0]  %s3943_s0, 256, %s21_s28, [#allocation3], %s3383_s15, %s3383_s15, %s3384_s16  }
  0x12   :  { %3378 = dma.done.wait [#allocation3], 256  }
  0x13   :  { %3379 = vsyncadd [#allocation3], 4294967040  ;;  %vm47_vm0 = vcmask 261120   ;;  %v44_v0 = vld [vmem:[#allocation2] sm:$0xff]  ;;  %v45_v1 = vld [vmem:[#allocation2 + $0x8] sm:$0xff]  ;;  %v75_v22 = vlaneseq  ;;  %s3385_s29 = smov 112  }
  0x14   :  { %v48_v2 = vsel %vm47_vm0, %v44_v0, 0.0  ;;  %v51_v3 = vsel %vm47_vm0, %v45_v1, 0.0  ;;  %v87_v14 = vld [vmem:[%s3944_s1] sm:$0xff]  ;;  %v88_v15 = vld [vmem:[%s3944_s1 + $0x8] sm:$0xff]  ;;  %v89_v16 = vld [vmem:[%s3944_s1 + $0x10] sm:$0xff]  ;;  %s3386_s30 = smov 120  }
  0x15   :  { %49 = vadd.xlane.f32.xlu0 %v48_v2  ;;  %v3236_v17 = vpack.c.bf16 %v88_v15, %v87_v14  ;;  %v90_v18 = vld [vmem:[%s3944_s1 + $0x18] sm:$0xff]  ;;  %v3473_v26 = vshrl.u32 %v75_v22, 7  ;;  %v46_v29 = vld [vmem:[%s3949_s6] sm:$0x3f]  ;;  %s3387_s9 = smov 104   ;;  %v3389_v51 = vmov 0.0  }
  0x16   :  { %v3240_v19 = vpack.c.bf16 %v90_v18, %v89_v16  ;;  %v2994_v41 = vld [vmem:[%s3945_s2] ss:$0 sm:$0xff]  ;;  %s3388_s2 = smov 96   ;;  %3125 = vmatprep.subr.mxu0 %v3389_v51  ;;  %vm3390_vm1 = vmmov 0   ;;  %v3391_v53 = vmov 1983009808  }
  0x17   :  { %3237 = vmatprep.subr.bf16.mxu1 %v3236_v17  ;;  %v77_v28 = vsub.s32 0, %v3473_v26  ;;  %v83_v30 = vsub.s32 1, %v3473_v26  ;;  %3127 = vmatprep.mubr.msk.f32.mxu0 %vm3390_vm1, %v3389_v51  ;;  %v202_v54 = vunpack.c.l.s4 %v3391_v53  ;;  %v3392_v56 = vmov 1934713408   ;;  %s3393_s10 = smov 64   ;;  %s3394_s11 = smov 16  }
  0x18   :  { %3239 = vmatpush3.bf16.msra.mxu1 %v3236_v17  ;;  %v234_v57 = vunpack.c.l.s4 %v3392_v56  ;;  %vm1063_vm2 = vcmask 64512   ;;  %s3395_s12 = smov 24   ;;  %vm2650_vm3 = vcmask 130048   ;;  %vm2653_vm4 = vcmask 195584  }
  0x19   :  { %52 = vadd.xlane.f32.xlu0 %v51_v3  ;;  %3241 = vmatprep.subr.bf16.mxu1 %v3240_v19  ;;  %v78_v31 = vrot.slane %v46_v29, %v77_v28  ;;  %v84_v34 = vrot.slane %v46_v29, %v83_v30  ;;  %v203_v55 = vunpack.c.0.s8 %v202_v54  ;;  %vm2891_vm5 = vcmask 523264  }
  0x1a   :  { %v235_v63 = vunpack.c.0.s8 %v234_v57 }
  0x1b   :  { %v3526_v60 = vsub.s32 %v203_v55, %v3473_v26 }
  0x1c   :  { %3243 = vmatpush3.bf16.msra.mxu1 %v3240_v19 }
  0x1d   :  { %3115 = vmatprep.subr.mxu1 %v3389_v51 }
  0xa2   :  { %v50_v4 = vpop.xlane.xlu0 %49 }
  0xa3   :  { %v55_v5 = vmul.f32 0.03125, %v50_v4  ;;  %v3537_v4 = vsub.s32 %v235_v63, %v3473_v26 }
  0xa5   :  { %v57_v6 = vsub.f32 %v44_v0, %v55_v5 }
  0xa6   :  { %v53_v7 = vpop.xlane.xlu0 %52 }
  0xa7   :  { %v56_v8 = vmul.f32 0.03125, %v53_v7  ;;  %v59_v9 = vmul.f32 %v57_v6, %v57_v6 }
  0xa9   :  { %v58_v10 = vsub.f32 %v45_v1, %v56_v8  ;;  %v61_v11 = vsel %vm47_vm0, %v59_v9, 0.0 }
  0xaa   :  { %62 = vadd.xlane.f32.xlu1 %v61_v11 }
  0xab   :  { %v60_v12 = vmul.f32 %v58_v10, %v58_v10 }
  0xad   :  { %v64_v13 = vsel %vm47_vm0, %v60_v12, 0.0 }
  0xae   :  { %65 = vadd.xlane.f32.xlu1 %v64_v13 }
 0x137   :  { %v63_v20 = vpop.xlane.xlu1 %62 }
 0x138   :  { %v67_v21 = vmul.f32 0.03125, %v63_v20 }
 0x13a   :  { %v69_v23 = vadd.f32 1e-12, %v67_v21 }
 0x13b   :  { %v66_v24 = vpop.xlane.xlu1 %65 }
 0x13c   :  { %3291 = vrsqrt.f32 %v69_v23  ;;  %v68_v25 = vmul.f32 0.03125, %v66_v24 }
 0x13e   :  { %v70_v27 = vadd.f32 1e-12, %v68_v25 }
 0x140   :  { %3293 = vrsqrt.f32 %v70_v27 }
 0x146   :  { %v3292_v32 = vpop.eup %3291 }
 0x147   :  { %v73_v33 = vmul.f32 %v3292_v32, %v57_v6 }
 0x149   :  { %v79_v35 = vmul.f32 %v78_v31, %v73_v33 }
 0x14a   :  { %v3294_v36 = vpop.eup %3293 }
 0x14b   :  { %v74_v37 = vmul.f32 %v3294_v36, %v58_v10  ;;  %v85_v38 = vadd.f32 %v84_v34, %v79_v35 }
 0x14d   :  { %v80_v39 = vmul.f32 %v78_v31, %v74_v37  ;;  %3112 = vmatprep.mubr.msk.f32.mxu1 %vm47_vm0, %v85_v38 }
 0x14f   :  { %v86_v40 = vadd.f32 %v84_v34, %v80_v39 }
 0x151   :  { %3113 = vmatmul.mubr.msk.f32.vlgmr.msra.gmra.mrb[0].mxu1 %vm47_vm0, %v86_v40 }
 0x152   :  { %3117 = vmatprep.mubr.msk.f32.mxu1 %vm3390_vm1, %v3389_v51 }
 0x224   :  { %v3114_v42 = vpop.f32.mrb[0].mxu1 }
 0x225   :  { %v170_v43 = vpop.f32.mrb[1].mxu1  ;;  %v3489_v45 = vadd.f32 %v3114_v42, %v2994_v41 }
 0x226   :  { %v3485_v44 = vadd.f32 %v2994_v41, %v170_v43 }
 0x228   :  { %187 = vrot.lane.b32.xlu1 %v3485_v44, %s3385_s29  ;;  %181 = vrot.lane.b32.xlu0 %v3485_v44, %s3386_s30 }
 0x22c   :  { %193 = vrot.lane.b32.xlu1 %v3485_v44, %s3387_s9  ;;  %189 = vrot.lane.b32.xlu0 %v3489_v45, %s3385_s29 }
 0x230   :  { %183 = vrot.lane.b32.xlu1 %v3489_v45, %s3386_s30  ;;  %471 = vrot.lane.b32.xlu0 %v3485_v44, %s3388_s2 }
 0x234   :  { %195 = vrot.lane.b32.xlu1 %v3489_v45, %s3387_s9 }
 0x29a   :  { %v3496_v46 = vpop.permute.xlu1 %187  ;;  %v3498_v47 = vpop.permute.xlu0 %181 }
 0x29b   :  { %479 = vrot.lane.b32.xlu0 %v3496_v46, %s3388_s2  ;;  %475 = vrot.lane.b32.xlu1 %v3498_v47, %s3388_s2  ;;  %v199_v61 = vcombine.low %v3485_v44, %v3496_v46  ;;  %v200_v62 = vcombine.high %v3485_v44, %v3496_v46 }
 0x29d   :  { %v207_v2 = vrot.slane %v199_v61, %v3526_v60  ;;  %v214_v3 = vrot.slane %v200_v62, %v3526_v60 }
 0x29e   :  { %v3502_v48 = vpop.permute.xlu1 %193  ;;  %v3506_v49 = vpop.permute.xlu0 %189 }
 0x29f   :  { %473 = vrot.lane.b32.xlu0 %v3489_v45, %s3388_s2  ;;  %483 = vrot.lane.b32.xlu1 %v3502_v48, %s3388_s2  ;;  %v215_v58 = vcombine.low %v3498_v47, %v3502_v48  ;;  %v216_v59 = vcombine.high %v3498_v47, %v3502_v48  ;;  %v267_v15 = vcombine.low %v3489_v45, %v3506_v49 }
 0x2a0   :  { %v268_v21 = vcombine.high %v3489_v45, %v3506_v49 }
 0x2a1   :  { %v223_v0 = vrot.slane %v215_v58, %v3526_v60  ;;  %v230_v1 = vrot.slane %v216_v59, %v3526_v60  ;;  %v275_v24 = vrot.slane %v267_v15, %v3526_v60 }
 0x2a2   :  { %v3508_v50 = vpop.permute.xlu1 %183  ;;  %v472_v16 = vpop.permute.xlu0 %471  ;;  %v282_v32 = vrot.slane %v268_v21, %v3526_v60 }
 0x2a3   :  { %481 = vrot.lane.b32.xlu0 %v3506_v49, %s3388_s2  ;;  %477 = vrot.lane.b32.xlu1 %v3508_v50, %s3388_s2  ;;  %v231_v5 = vcombine.low %v207_v2, %v223_v0  ;;  %v232_v6 = vcombine.high %v207_v2, %v223_v0  ;;  %v247_v7 = vcombine.low %v214_v3, %v230_v1 }
 0x2a4   :  { %v248_v8 = vcombine.high %v214_v3, %v230_v1 }
 0x2a5   :  { %v239_v9 = vrot.slane %v231_v5, %v3537_v4  ;;  %v246_v10 = vrot.slane %v232_v6, %v3537_v4  ;;  %v255_v11 = vrot.slane %v247_v7, %v3537_v4 }
 0x2a6   :  { %v3513_v52 = vpop.permute.xlu1 %195  ;;  %v262_v12 = vrot.slane %v248_v8, %v3537_v4 }
 0x2a7   :  { %485 = vrot.lane.b32.xlu1 %v3513_v52, %s3388_s2  ;;  %v283_v13 = vcombine.low %v3508_v50, %v3513_v52  ;;  %v335_v14 = vcombine.low %v239_v9, %v246_v10  ;;  %v2997_v17 = vcombine.high %v239_v9, %v246_v10  ;;  %v284_v20 = vcombine.high %v3508_v50, %v3513_v52 }
 0x2a8   :  { %v351_v18 = vcombine.low %v255_v11, %v262_v12  ;;  %v2998_v19 = vcombine.high %v255_v11, %v262_v12 }
 0x2a9   :  { %v291_v22 = vrot.slane %v283_v13, %v3526_v60  ;;  %v342_v23 = vrot.slane %v335_v14, %v3526_v60  ;;  %v350_v28 = vrot.slane %v2997_v17, %v3526_v60  ;;  %v298_v31 = vrot.slane %v284_v20, %v3526_v60 }
 0x2aa   :  { %v358_v29 = vrot.slane %v351_v18, %v3526_v60  ;;  %v366_v30 = vrot.slane %v2998_v19, %v3526_v60 }
 0x2ab   :  { %v299_v33 = vcombine.low %v275_v24, %v291_v22  ;;  %v300_v34 = vcombine.high %v275_v24, %v291_v22  ;;  %v315_v38 = vcombine.low %v282_v32, %v298_v31  ;;  %v316_v39 = vcombine.high %v282_v32, %v298_v31 }
 0x2ac   :  { %v367_v41 = vcombine.low %v342_v23, %v350_v28  ;;  %v383_v42 = vcombine.low %v358_v29, %v366_v30  ;;  %v368_v56 = vcombine.high %v342_v23, %v350_v28  ;;  %v384_v57 = vcombine.high %v358_v29, %v366_v30 }
 0x2ad   :  { %v307_v54 = vrot.slane %v299_v33, %v3537_v4  ;;  %v314_v55 = vrot.slane %v300_v34, %v3537_v4  ;;  %v323_v63 = vrot.slane %v315_v38, %v3537_v4  ;;  %v330_v0 = vrot.slane %v316_v39, %v3537_v4 }
 0x2ae   :  { %v3568_v2 = vrot.slane %v367_v41, %v3537_v4  ;;  %v3571_v3 = vrot.slane %v383_v42, %v3537_v4  ;;  %v3574_v12 = vrot.slane %v368_v56, %v3537_v4  ;;  %v3577_v13 = vrot.slane %v384_v57, %v3537_v4 }
 0x2af   :  { %v403_v10 = vcombine.low %v307_v54, %v314_v55  ;;  %v2999_v11 = vcombine.high %v307_v54, %v314_v55  ;;  %v419_v18 = vcombine.low %v323_v63, %v330_v0  ;;  %v3000_v19 = vcombine.high %v323_v63, %v330_v0 }
 0x2b1   :  { %v3584_v28 = vrot.slane %v403_v10, %v3526_v60  ;;  %v3587_v29 = vrot.slane %v2999_v11, %v3526_v60 }
 0x30d   :  { %v476_v25 = vpop.permute.xlu1 %475  ;;  %v480_v27 = vpop.permute.xlu0 %479 }
 0x30e   :  { %v495_v35 = vcombine.low %v472_v16, %v480_v27  ;;  %v496_v36 = vcombine.high %v472_v16, %v480_v27 }
 0x310   :  { %v503_v58 = vrot.slane %v495_v35, %v3526_v60  ;;  %v510_v59 = vrot.slane %v496_v36, %v3526_v60 }
 0x311   :  { %v474_v37 = vpop.permute.xlu0 %473  ;;  %v484_v40 = vpop.permute.xlu1 %483 }
 0x312   :  { %v511_v43 = vcombine.low %v476_v25, %v484_v40  ;;  %v512_v53 = vcombine.high %v476_v25, %v484_v40 }
 0x314   :  { %v519_v61 = vrot.slane %v511_v43, %v3526_v60  ;;  %v526_v62 = vrot.slane %v512_v53, %v3526_v60 }
 0x315   :  { %v478_v1 = vpop.permute.xlu1 %477  ;;  %v482_v9 = vpop.permute.xlu0 %481 }
 0x316   :  { %v527_v5 = vcombine.low %v503_v58, %v519_v61  ;;  %v528_v6 = vcombine.high %v503_v58, %v519_v61  ;;  %v543_v7 = vcombine.low %v510_v59, %v526_v62  ;;  %v544_v8 = vcombine.high %v510_v59, %v526_v62 }
 0x317   :  { %v563_v20 = vcombine.low %v474_v37, %v482_v9  ;;  %v564_v21 = vcombine.high %v474_v37, %v482_v9 }
 0x318   :  { %v535_v14 = vrot.slane %v527_v5, %v3537_v4  ;;  %v542_v15 = vrot.slane %v528_v6, %v3537_v4  ;;  %v551_v16 = vrot.slane %v543_v7, %v3537_v4  ;;  %v558_v17 = vrot.slane %v544_v8, %v3537_v4 }
 0x319   :  { %v486_v22 = vpop.permute.xlu1 %485  ;;  %v571_v36 = vrot.slane %v563_v20, %v3526_v60  ;;  %v578_v37 = vrot.slane %v564_v21, %v3526_v60  ;;  %v426_v5 = vrot.slane %v419_v18, %v3526_v60  ;;  %v434_v6 = vrot.slane %v3000_v19, %v3526_v60 }
 0x31a   :  { %v631_v23 = vcombine.low %v535_v14, %v542_v15  ;;  %v3001_v24 = vcombine.high %v535_v14, %v542_v15  ;;  %v647_v25 = vcombine.low %v551_v16, %v558_v17  ;;  %v3002_v27 = vcombine.high %v551_v16, %v558_v17 }
 0x31b   :  { %v579_v30 = vcombine.low %v478_v1, %v486_v22  ;;  %v580_v31 = vcombine.high %v478_v1, %v486_v22  ;;  %v399_v15 = vcombine.low %v3568_v2, %v3571_v3  ;;  %v401_v20 = vcombine.low %v3574_v12, %v3577_v13 }
 0x31c   :  { %v638_v32 = vrot.slane %v631_v23, %v3526_v60  ;;  %v646_v33 = vrot.slane %v3001_v24, %v3526_v60  ;;  %v654_v34 = vrot.slane %v647_v25, %v3526_v60  ;;  %v662_v35 = vrot.slane %v3002_v27, %v3526_v60 }
 0x31d   :  { %v587_v38 = vrot.slane %v579_v30, %v3526_v60  ;;  %v594_v39 = vrot.slane %v580_v31, %v3526_v60  ;;  %v435_v22 = vcombine.low %v3584_v28, %v3587_v29  ;;  %v451_v23 = vcombine.low %v426_v5, %v434_v6 }
 0x31e   :  { %v663_v40 = vcombine.low %v638_v32, %v646_v33  ;;  %v679_v41 = vcombine.low %v654_v34, %v662_v35  ;;  %v664_v42 = vcombine.high %v638_v32, %v646_v33  ;;  %v680_v43 = vcombine.high %v654_v34, %v662_v35 }
 0x31f   :  { %v595_v53 = vcombine.low %v571_v36, %v587_v38  ;;  %v596_v54 = vcombine.high %v571_v36, %v587_v38  ;;  %v611_v55 = vcombine.low %v578_v37, %v594_v39  ;;  %v612_v56 = vcombine.high %v578_v37, %v594_v39 }
 0x320   :  { %v671_v57 = vrot.slane %v663_v40, %v3537_v4  ;;  %v687_v58 = vrot.slane %v679_v41, %v3537_v4  ;;  %v678_v59 = vrot.slane %v664_v42, %v3537_v4  ;;  %v694_v61 = vrot.slane %v680_v43, %v3537_v4 }
 0x321   :  { %v603_v62 = vrot.slane %v595_v53, %v3537_v4  ;;  %v610_v63 = vrot.slane %v596_v54, %v3537_v4  ;;  %v619_v0 = vrot.slane %v611_v55, %v3537_v4  ;;  %v626_v1 = vrot.slane %v612_v56, %v3537_v4 }
 0x322   :  { %v695_v7 = vcombine.low %v671_v57, %v687_v58  ;;  %v697_v8 = vcombine.low %v678_v59, %v694_v61  ;;  %v696_v21 = vcombine.high %v671_v57, %v687_v58  ;;  %v400_v31 = vcombine.high %v3568_v2, %v3571_v3 }
 0x323   :  { %v699_v9 = vcombine.low %v603_v62, %v610_v63  ;;  %v3003_v10 = vcombine.high %v603_v62, %v610_v63  ;;  %v715_v11 = vcombine.low %v619_v0, %v626_v1  ;;  %v3004_v14 = vcombine.high %v619_v0, %v626_v1 }
 0x324   :  { %3116 = vmatpush3.xpose.msk.msra.mxu1 %vm1063_vm2, %v695_v7  ;;  %3126 = vmatpush3.xpose.msk.msra.mxu0 %vm1063_vm2, %v697_v8  ;;  %v436_v34 = vcombine.high %v3584_v28, %v3587_v29  ;;  %v698_v35 = vcombine.high %v678_v59, %v694_v61  ;;  %v443_v36 = vrot.slane %v435_v22, %v3537_v4 }
 0x325   :  { %v706_v16 = vrot.slane %v699_v9, %v3526_v60  ;;  %v714_v17 = vrot.slane %v3003_v10, %v3526_v60  ;;  %v722_v18 = vrot.slane %v715_v11, %v3526_v60  ;;  %v730_v19 = vrot.slane %v3004_v14, %v3526_v60  ;;  %3120 = vmatprep.subr.mxu1 %v3389_v51 }
 0x326   :  { %3135 = vmatprep.subr.mxu0 %v3389_v51  ;;  %v459_v2 = vrot.slane %v451_v23, %v3537_v4  ;;  %v452_v3 = vcombine.high %v426_v5, %v434_v6  ;;  %v402_v28 = vcombine.high %v3574_v12, %v3577_v13  ;;  %v450_v41 = vrot.slane %v436_v34, %v3537_v4 }
 0x327   :  { %v731_v24 = vcombine.low %v706_v16, %v714_v17  ;;  %v732_v25 = vcombine.high %v706_v16, %v714_v17  ;;  %v747_v27 = vcombine.low %v722_v18, %v730_v19  ;;  %v748_v30 = vcombine.high %v722_v18, %v730_v19  ;;  %3118 = vmatmul.mubr.msk.f32.vlgmr.msra.gmra.mrb[2].mxu1 %vm1063_vm2, %v399_v15 }
 0x328   :  { %3128 = vmatmul.mubr.msk.f32.vlgmr.msra.gmra.mrb[0].mxu0 %vm1063_vm2, %v401_v20  ;;  %3121 = vmatpush3.xpose.msk.msra.mxu1 %vm1063_vm2, %v696_v21  ;;  %v467_v29 = vcombine.low %v443_v36, %v459_v2  ;;  %v466_v42 = vrot.slane %v452_v3, %v3537_v4  ;;  %v468_v12 = vcombine.high %v443_v36, %v459_v2 }
 0x329   :  { %3122 = vmatprep.mubr.msk.f32.mxu1 %vm3390_vm1, %v3389_v51  ;;  %3130 = vmatprep.subr.mxu1 %v3389_v51  ;;  %v739_v32 = vrot.slane %v731_v24, %v3537_v4  ;;  %v755_v33 = vrot.slane %v747_v27, %v3537_v4  ;;  %v746_v38 = vrot.slane %v732_v25, %v3537_v4 }
 0x32a   :  { %3137 = vmatprep.mubr.msk.f32.mxu0 %vm3390_vm1, %v3389_v51  ;;  %v762_v39 = vrot.slane %v748_v30, %v3537_v4  ;;  %v469_v13 = vcombine.low %v450_v41, %v466_v42  ;;  %v470_v54 = vcombine.high %v450_v41, %v466_v42 }
 0x32b   :  { %3123 = vmatmul.mubr.msk.f32.vlgmr.msra.gmra.mrb[4].mxu1 %vm1063_vm2, %v400_v31  ;;  %v763_v37 = vcombine.low %v739_v32, %v755_v33  ;;  %v764_v40 = vcombine.high %v739_v32, %v755_v33 }
 0x32c   :  { %3131 = vmatpush3.xpose.msk.msra.mxu1 %vm1063_vm2, %v698_v35  ;;  %3132 = vmatprep.mubr.msk.f32.mxu1 %vm3390_vm1, %v3389_v51  ;;  %v765_v43 = vcombine.low %v746_v38, %v762_v39  ;;  %v766_v53 = vcombine.high %v746_v38, %v762_v39 }
 0x32d   :  { %3136 = vmatpush3.xpose.msk.msra.mxu0 %vm1063_vm2, %v763_v37  ;;  %3140 = vmatprep.subr.mxu1 %v3389_v51 }
 0x32e   :  { %3145 = vmatprep.subr.mxu0 %v3389_v51 }
 0x32f   :  { %3133 = vmatmul.mubr.msk.f32.vlgmr.msra.gmra.mrb[6].mxu1 %vm1063_vm2, %v402_v28 }
 0x330   :  { %3138 = vmatmul.mubr.msk.f32.vlgmr.msra.gmra.mrb[2].mxu0 %vm1063_vm2, %v467_v29  ;;  %3141 = vmatpush3.xpose.msk.msra.mxu1 %vm1063_vm2, %v764_v40 }
 0x331   :  { %3146 = vmatpush3.xpose.msk.msra.mxu0 %vm1063_vm2, %v765_v43  ;;  %3142 = vmatprep.mubr.msk.f32.mxu1 %vm3390_vm1, %v3389_v51 }
 0x332   :  { %3147 = vmatprep.mubr.msk.f32.mxu0 %vm3390_vm1, %v3389_v51  ;;  %3150 = vmatprep.subr.mxu1 %v3389_v51 }
 0x333   :  { %3143 = vmatmul.mubr.msk.f32.vlgmr.msra.gmra.mrb[8].mxu1 %vm1063_vm2, %v468_v12  ;;  %3155 = vmatprep.subr.mxu0 %v3389_v51 }
 0x334   :  { %3148 = vmatmul.mubr.msk.f32.vlgmr.msra.gmra.mrb[4].mxu0 %vm1063_vm2, %v469_v13  ;;  %3151 = vmatpush3.xpose.msk.msra.mxu1 %vm1063_vm2, %v766_v53 }
 0x335   :  { %3152 = vmatprep.mubr.msk.f32.mxu1 %vm3390_vm1, %v3389_v51  ;;  %3160 = vmatprep.subr.mxu1 %v3389_v51 }
 0x336   :  { %3157 = vmatprep.mubr.msk.f32.mxu0 %vm3390_vm1, %v3389_v51 }
 0x337   :  { %3153 = vmatmul.mubr.msk.f32.vlgmr.msra.gmra.mrb[10].mxu1 %vm1063_vm2, %v470_v54 }
 0x338   :  { %3162 = vmatprep.mubr.msk.f32.mxu1 %vm3390_vm1, %v3389_v51 }
 0x3fa   :  { %v1136_v55 = vpop.f32.mrb[2].mxu1 }
 0x3fb   :  { %v1672_v56 = vmul.f32 0.35355338, %v1136_v55  ;;  %v1288_v57 = vpop.f32.mrb[0].mxu0  ;;  %v3119_v58 = vpop.f32.mrb[3].mxu1 }
 0x3fc   :  { %v3129_v59 = vpop.f32.mrb[1].mxu0  ;;  %v1674_v61 = vmul.f32 0.35355338, %v1288_v57 }
 0x3fd   :  { %v1680_v62 = vsel %vm1063_vm2, %v1672_v56, -inf }
 0x3fe   :  { %1681 = vmax.xlane.f32.xlu0 %v1680_v62  ;;  %v1212_v63 = vpop.f32.mrb[4].mxu1  ;;  %v1686_v5 = vsel %vm1063_vm2, %v1674_v61, -inf }
 0x3ff   :  { %v1673_v0 = vmul.f32 0.35355338, %v1212_v63  ;;  %v3124_v1 = vpop.f32.mrb[5].mxu1 }
 0x401   :  { %v1683_v6 = vsel %vm1063_vm2, %v1673_v0, -inf }
 0x402   :  { %1687 = vmax.xlane.f32.xlu0 %v1686_v5  ;;  %1684 = vmax.xlane.f32.xlu1 %v1683_v6  ;;  %v1364_v7 = vpop.f32.mrb[6].mxu1 }
 0x403   :  { %v1440_v8 = vpop.f32.mrb[2].mxu0  ;;  %v3134_v9 = vpop.f32.mrb[7].mxu1  ;;  %v1675_v14 = vmul.f32 0.35355338, %v1364_v7 }
 0x404   :  { %v1676_v10 = vmul.f32 0.35355338, %v1440_v8  ;;  %v3139_v11 = vpop.f32.mrb[3].mxu0 }
 0x405   :  { %v1689_v22 = vsel %vm1063_vm2, %v1675_v14, -inf }
 0x406   :  { %v1516_v15 = vpop.f32.mrb[8].mxu1  ;;  %v1692_v16 = vsel %vm1063_vm2, %v1676_v10, -inf }
 0x407   :  { %1693 = vmax.xlane.f32.xlu0 %v1692_v16  ;;  %v1592_v17 = vpop.f32.mrb[4].mxu0  ;;  %v3144_v18 = vpop.f32.mrb[9].mxu1  ;;  %v1677_v25 = vmul.f32 0.35355338, %v1516_v15 }
 0x408   :  { %v3149_v19 = vpop.f32.mrb[5].mxu0  ;;  %v1678_v20 = vmul.f32 0.35355338, %v1592_v17 }
 0x409   :  { %v1695_v30 = vsel %vm1063_vm2, %v1677_v25, -inf }
 0x40a   :  { %v1668_v21 = vpop.f32.mrb[10].mxu1  ;;  %v1698_v24 = vsel %vm1063_vm2, %v1678_v20, -inf }
 0x40b   :  { %1690 = vmax.xlane.f32.xlu0 %v1689_v22  ;;  %v3154_v23 = vpop.f32.mrb[11].mxu1  ;;  %v1679_v27 = vmul.f32 0.35355338, %v1668_v21 }
 0x40d   :  { %v1701_v31 = vsel %vm1063_vm2, %v1679_v27, -inf }
 0x40f   :  { %1699 = vmax.xlane.f32.xlu0 %v1698_v24 }
 0x413   :  { %771 = vrot.lane.b32.xlu1 %v3498_v47, %s3393_s10 }
 0x417   :  { %775 = vrot.lane.b32.xlu1 %v3496_v46, %s3393_s10 }
 0x425   :  { %767 = vrot.lane.b32.xlu0 %v3485_v44, %s3393_s10 }
 0x43b   :  { %1696 = vmax.xlane.f32.xlu1 %v1695_v30 }
 0x43f   :  { %1702 = vmax.xlane.f32.xlu1 %v1701_v31 }
 0x450   :  { %779 = vrot.lane.b32.xlu1 %v3502_v48, %s3393_s10 }
 0x48b   :  { %v1682_v32 = vpop.xlane.xlu0 %1681 }
 0x48c   :  { %v1704_v33 = vsub.f32 %v1672_v56, %v1682_v32 }
 0x48e   :  { %v1712_v47 = vmul.f32 1.442695, %v1704_v33 }
 0x48f   :  { %v1685_v34 = vpop.xlane.xlu1 %1684  ;;  %v1688_v35 = vpop.xlane.xlu0 %1687 }
 0x490   :  { %3295 = vpow2.f32 %v1712_v47  ;;  %v1705_v46 = vsub.f32 %v1673_v0, %v1685_v34  ;;  %v1706_v36 = vsub.f32 %v1674_v61, %v1688_v35 }
 0x492   :  { %v1714_v44 = vmul.f32 1.442695, %v1705_v46  ;;  %v1716_v2 = vmul.f32 1.442695, %v1706_v36 }
 0x493   :  { %v772_v62 = vpop.permute.xlu1 %771 }
 0x494   :  { %3297 = vpow2.f32 %v1714_v44  ;;  %v1694_v3 = vpop.xlane.xlu0 %1693 }
 0x495   :  { %3299 = vpow2.f32 %v1716_v2  ;;  %v1708_v37 = vsub.f32 %v1676_v10, %v1694_v3 }
 0x497   :  { %v1720_v38 = vmul.f32 1.442695, %v1708_v37  ;;  %v776_v63 = vpop.permute.xlu1 %775 }
 0x498   :  { %v1691_v39 = vpop.xlane.xlu0 %1690 }
 0x499   :  { %3301 = vpow2.f32 %v1720_v38  ;;  %v1707_v28 = vsub.f32 %v1675_v14, %v1691_v39 }
 0x49a   :  { %v3687_v29 = vpop.eup %3295 }
 0x49b   :  { %v1718_v48 = vmul.f32 1.442695, %v1707_v28  ;;  %v1728_v40 = vsel %vm1063_vm2, %v3687_v29, 0.0 }
 0x49c   :  { %v1700_v41 = vpop.xlane.xlu0 %1699  ;;  %1729 = vadd.xlane.f32.xlu0 %v1728_v40 }
 0x49d   :  { %3303 = vpow2.f32 %v1718_v48  ;;  %v1710_v42 = vsub.f32 %v1678_v20, %v1700_v41 }
 0x49e   :  { %v3691_v43 = vpop.eup %3297 }
 0x49f   :  { %v3693_v12 = vpop.eup %3299  ;;  %v1724_v13 = vmul.f32 1.442695, %v1710_v42  ;;  %v1731_v53 = vsel %vm1063_vm2, %v3691_v43, 0.0 }
 0x4a0   :  { %1732 = vadd.xlane.f32.xlu1 %v1731_v53  ;;  %v1734_v54 = vsel %vm1063_vm2, %v3693_v12, 0.0  ;;  %v768_v6 = vpop.permute.xlu0 %767 }
 0x4a1   :  { %3305 = vpow2.f32 %v1724_v13  ;;  %1735 = vadd.xlane.f32.xlu0 %v1734_v54  ;;  %v791_v9 = vcombine.low %v768_v6, %v776_v63  ;;  %v792_v10 = vcombine.high %v768_v6, %v776_v63 }
 0x4a3   :  { %v3699_v55 = vpop.eup %3301  ;;  %v799_v17 = vrot.slane %v791_v9, %v3526_v60  ;;  %v806_v18 = vrot.slane %v792_v10, %v3526_v60 }
 0x4a4   :  { %v1740_v56 = vsel %vm1063_vm2, %v3699_v55, 0.0 }
 0x4a5   :  { %1741 = vadd.xlane.f32.xlu0 %v1740_v56 }
 0x4a7   :  { %v3703_v57 = vpop.eup %3303 }
 0x4a8   :  { %v1737_v58 = vsel %vm1063_vm2, %v3703_v57, 0.0 }
 0x4a9   :  { %1738 = vadd.xlane.f32.xlu1 %v1737_v58 }
 0x4ab   :  { %v3707_v59 = vpop.eup %3305 }
 0x4ac   :  { %v1746_v61 = vsel %vm1063_vm2, %v3707_v59, 0.0 }
 0x4ad   :  { %1747 = vadd.xlane.f32.xlu0 %v1746_v61 }
 0x4c8   :  { %v1697_v0 = vpop.xlane.xlu1 %1696 }
 0x4c9   :  { %v1709_v1 = vsub.f32 %v1677_v25, %v1697_v0 }
 0x4cb   :  { %v1722_v5 = vmul.f32 1.442695, %v1709_v1 }
 0x4cc   :  { %v1703_v7 = vpop.xlane.xlu1 %1702 }
 0x4cd   :  { %3307 = vpow2.f32 %v1722_v5  ;;  %v1711_v8 = vsub.f32 %v1679_v27, %v1703_v7 }
 0x4cf   :  { %v1726_v11 = vmul.f32 1.442695, %v1711_v8 }
 0x4d0   :  { %v780_v14 = vpop.permute.xlu1 %779 }
 0x4d1   :  { %3309 = vpow2.f32 %v1726_v11  ;;  %v807_v15 = vcombine.low %v772_v62, %v780_v14  ;;  %v808_v16 = vcombine.high %v772_v62, %v780_v14 }
 0x4d3   :  { %v815_v19 = vrot.slane %v807_v15, %v3526_v60  ;;  %v822_v20 = vrot.slane %v808_v16, %v3526_v60 }
 0x4d5   :  { %v823_v21 = vcombine.low %v799_v17, %v815_v19  ;;  %v824_v22 = vcombine.high %v799_v17, %v815_v19  ;;  %v839_v23 = vcombine.low %v806_v18, %v822_v20  ;;  %v840_v24 = vcombine.high %v806_v18, %v822_v20 }
 0x4d7   :  { %v3715_v25 = vpop.eup %3307  ;;  %v831_v27 = vrot.slane %v823_v21, %v3537_v4  ;;  %v838_v30 = vrot.slane %v824_v22, %v3537_v4  ;;  %v847_v31 = vrot.slane %v839_v23, %v3537_v4  ;;  %v854_v32 = vrot.slane %v840_v24, %v3537_v4 }
 0x4d8   :  { %v1743_v33 = vsel %vm1063_vm2, %v3715_v25, 0.0 }
 0x4d9   :  { %v927_v47 = vcombine.low %v831_v27, %v838_v30  ;;  %v3005_v34 = vcombine.high %v831_v27, %v838_v30  ;;  %v943_v35 = vcombine.low %v847_v31, %v854_v32  ;;  %v3006_v46 = vcombine.high %v847_v31, %v854_v32  ;;  %1744 = vadd.xlane.f32.xlu1 %v1743_v33 }
 0x4db   :  { %v3723_v36 = vpop.eup %3309  ;;  %v934_v44 = vrot.slane %v927_v47, %v3526_v60  ;;  %v942_v2 = vrot.slane %v3005_v34, %v3526_v60  ;;  %v950_v3 = vrot.slane %v943_v35, %v3526_v60  ;;  %v958_v37 = vrot.slane %v3006_v46, %v3526_v60 }
 0x4dc   :  { %v1749_v38 = vsel %vm1063_vm2, %v3723_v36, 0.0 }
 0x4dd   :  { %1750 = vadd.xlane.f32.xlu0 %v1749_v38  ;;  %v959_v39 = vcombine.low %v934_v44, %v942_v2  ;;  %v975_v28 = vcombine.low %v950_v3, %v958_v37  ;;  %v960_v48 = vcombine.high %v934_v44, %v942_v2  ;;  %v976_v40 = vcombine.high %v950_v3, %v958_v37 }
 0x4df   :  { %v967_v41 = vrot.slane %v959_v39, %v3537_v4  ;;  %v983_v42 = vrot.slane %v975_v28, %v3537_v4  ;;  %v974_v13 = vrot.slane %v960_v48, %v3537_v4  ;;  %v990_v53 = vrot.slane %v976_v40, %v3537_v4 }
 0x4e1   :  { %v991_v54 = vcombine.low %v967_v41, %v983_v42  ;;  %v992_v56 = vcombine.high %v967_v41, %v983_v42  ;;  %v993_v58 = vcombine.low %v974_v13, %v990_v53  ;;  %v994_v61 = vcombine.high %v974_v13, %v990_v53 }
 0x4e3   :  { %3156 = vmatpush3.msra.mxu0 %v991_v54  ;;  %3161 = vmatpush3.msra.mxu1 %v992_v56 }
 0x4e4   :  { %3165 = vmatprep.subr.mxu0 %v3389_v51  ;;  %3170 = vmatprep.subr.mxu1 %v3389_v51 }
 0x4ea   :  { %773 = vrot.lane.b32.xlu1 %v3508_v50, %s3393_s10 }
 0x4ee   :  { %777 = vrot.lane.b32.xlu1 %v3506_v49, %s3393_s10 }
 0x4f2   :  { %781 = vrot.lane.b32.xlu1 %v3513_v52, %s3393_s10 }
 0x4f3   :  { %769 = vrot.lane.b32.xlu0 %v3489_v45, %s3393_s10 }
 0x529   :  { %v1730_v62 = vpop.xlane.xlu0 %1729 }
 0x52a   :  { %3311 = vrcp.f32 %v1730_v62 }
 0x52d   :  { %v1733_v63 = vpop.xlane.xlu1 %1732 }
 0x52e   :  { %3313 = vrcp.f32 %v1733_v63  ;;  %v1736_v0 = vpop.xlane.xlu0 %1735 }
 0x52f   :  { %3315 = vrcp.f32 %v1736_v0 }
 0x534   :  { %v3312_v1 = vpop.eup %3311 }
 0x535   :  { %v1760_v5 = vmul.f32 %v3312_v1, %v3687_v29 }
 0x536   :  { %v1739_v6 = vpop.xlane.xlu1 %1738 }
 0x537   :  { %3317 = vrcp.f32 %v1739_v6  ;;  %3158 = vmatmul.mubr.msk.f32.vlgmr.msra.gmra.mrb[6].mxu0 %vm1063_vm2, %v1760_v5 }
 0x538   :  { %v3314_v49 = vpop.eup %3313  ;;  %3166 = vmatpush3.msra.mxu0 %v993_v58  ;;  %3167 = vmatprep.mubr.msk.f32.mxu0 %vm3390_vm1, %v3389_v51 }
 0x539   :  { %v3316_v50 = vpop.eup %3315  ;;  %v1761_v45 = vmul.f32 %v3314_v49, %v3691_v43  ;;  %3175 = vmatprep.subr.mxu0 %v3389_v51 }
 0x53a   :  { %v1762_v52 = vmul.f32 %v3316_v50, %v3693_v12  ;;  %v1742_v12 = vpop.xlane.xlu0 %1741 }
 0x53b   :  { %3163 = vmatmul.mubr.msk.f32.vlgmr.msra.gmra.mrb[12].mxu1 %vm1063_vm2, %v1761_v45  ;;  %3319 = vrcp.f32 %v1742_v12 }
 0x53c   :  { %3168 = vmatmul.mubr.msk.f32.vlgmr.msra.gmra.mrb[8].mxu0 %vm1063_vm2, %v1762_v52  ;;  %3171 = vmatpush3.msra.mxu1 %v994_v61 }
 0x53d   :  { %3172 = vmatprep.mubr.msk.f32.mxu1 %vm3390_vm1, %v3389_v51  ;;  %3180 = vmatprep.subr.mxu1 %v3389_v51 }
 0x53e   :  { %3177 = vmatprep.mubr.msk.f32.mxu0 %vm3390_vm1, %v3389_v51  ;;  %v1748_v7 = vpop.xlane.xlu0 %1747 }
 0x541   :  { %v3318_v29 = vpop.eup %3317 }
 0x542   :  { %v1763_v43 = vmul.f32 %v3318_v29, %v3703_v57 }
 0x544   :  { %3173 = vmatmul.mubr.msk.f32.vlgmr.msra.gmra.mrb[14].mxu1 %vm1063_vm2, %v1763_v43 }
 0x545   :  { %3182 = vmatprep.mubr.msk.f32.mxu1 %vm3390_vm1, %v3389_v51  ;;  %v3320_v39 = vpop.eup %3319 }
 0x546   :  { %v1764_v0 = vmul.f32 %v3320_v39, %v3699_v55 }
 0x566   :  { %v1745_v8 = vpop.xlane.xlu1 %1744 }
 0x567   :  { %3321 = vrcp.f32 %v1745_v8 }
 0x568   :  { %3323 = vrcp.f32 %v1748_v7 }
 0x56a   :  { %v774_v9 = vpop.permute.xlu1 %773  ;;  %v1751_v10 = vpop.xlane.xlu0 %1750 }
 0x56b   :  { %3325 = vrcp.f32 %v1751_v10 }
 0x56e   :  { %v778_v11 = vpop.permute.xlu1 %777  ;;  %v770_v14 = vpop.permute.xlu0 %769 }
 0x56f   :  { %v859_v15 = vcombine.low %v770_v14, %v778_v11  ;;  %v860_v16 = vcombine.high %v770_v14, %v778_v11 }
 0x571   :  { %v867_v57 = vrot.slane %v859_v15, %v3526_v60  ;;  %v874_v20 = vrot.slane %v860_v16, %v3526_v60  ;;  %v3322_v42 = vpop.eup %3321 }
 0x572   :  { %v782_v17 = vpop.permute.xlu1 %781  ;;  %v3324_v54 = vpop.eup %3323  ;;  %v1765_v1 = vmul.f32 %v3322_v42, %v3715_v25 }
 0x573   :  { %v875_v18 = vcombine.low %v774_v9, %v782_v17  ;;  %v876_v19 = vcombine.high %v774_v9, %v782_v17  ;;  %v1766_v49 = vmul.f32 %v3324_v54, %v3707_v59 }
 0x575   :  { %v883_v21 = vrot.slane %v875_v18, %v3526_v60  ;;  %v890_v22 = vrot.slane %v876_v19, %v3526_v60  ;;  %v3326_v63 = vpop.eup %3325 }
 0x576   :  { %v1767_v50 = vmul.f32 %v3326_v63, %v3723_v36 }
 0x577   :  { %v891_v23 = vcombine.low %v867_v57, %v883_v21  ;;  %v892_v24 = vcombine.high %v867_v57, %v883_v21  ;;  %v907_v27 = vcombine.low %v874_v20, %v890_v22  ;;  %v908_v30 = vcombine.high %v874_v20, %v890_v22 }
 0x579   :  { %v899_v31 = vrot.slane %v891_v23, %v3537_v4  ;;  %v906_v32 = vrot.slane %v892_v24, %v3537_v4  ;;  %v915_v33 = vrot.slane %v907_v27, %v3537_v4  ;;  %v922_v47 = vrot.slane %v908_v30, %v3537_v4 }
 0x57b   :  { %v995_v34 = vcombine.low %v899_v31, %v906_v32  ;;  %v3007_v35 = vcombine.high %v899_v31, %v906_v32  ;;  %v1011_v46 = vcombine.low %v915_v33, %v922_v47  ;;  %v3008_v44 = vcombine.high %v915_v33, %v922_v47 }
 0x57d   :  { %v1002_v2 = vrot.slane %v995_v34, %v3526_v60  ;;  %v1010_v3 = vrot.slane %v3007_v35, %v3526_v60  ;;  %v1018_v37 = vrot.slane %v1011_v46, %v3526_v60  ;;  %v1026_v38 = vrot.slane %v3008_v44, %v3526_v60 }
 0x57f   :  { %v1027_v28 = vcombine.low %v1002_v2, %v1010_v3  ;;  %v1043_v48 = vcombine.low %v1018_v37, %v1026_v38  ;;  %v1028_v40 = vcombine.high %v1002_v2, %v1010_v3  ;;  %v1044_v41 = vcombine.high %v1018_v37, %v1026_v38 }
 0x581   :  { %v1035_v13 = vrot.slane %v1027_v28, %v3537_v4  ;;  %v1051_v53 = vrot.slane %v1043_v48, %v3537_v4  ;;  %v1042_v56 = vrot.slane %v1028_v40, %v3537_v4  ;;  %v1058_v58 = vrot.slane %v1044_v41, %v3537_v4 }
 0x583   :  { %v1059_v61 = vcombine.low %v1035_v13, %v1051_v53  ;;  %v1060_v62 = vcombine.high %v1035_v13, %v1051_v53  ;;  %v1061_v5 = vcombine.low %v1042_v56, %v1058_v58  ;;  %v1062_v6 = vcombine.high %v1042_v56, %v1058_v58 }
 0x585   :  { %3176 = vmatpush3.msra.mxu0 %v1059_v61  ;;  %3181 = vmatpush3.msra.mxu1 %v1060_v62 }
 0x586   :  { %3178 = vmatmul.mubr.msk.f32.vlgmr.msra.gmra.mrb[10].mxu0 %vm1063_vm2, %v1764_v0  ;;  %3183 = vmatmul.mubr.msk.f32.vlgmr.msra.gmra.mrb[16].mxu1 %vm1063_vm2, %v1765_v1 }
 0x587   :  { %3185 = vmatprep.subr.mxu0 %v3389_v51  ;;  %3190 = vmatprep.subr.mxu1 %v3389_v51 }
 0x588   :  { %3186 = vmatpush3.msra.mxu0 %v1061_v5  ;;  %3191 = vmatpush3.msra.mxu1 %v1062_v6 }
 0x589   :  { %3187 = vmatprep.mubr.msk.f32.mxu0 %vm3390_vm1, %v3389_v51  ;;  %3192 = vmatprep.mubr.msk.f32.mxu1 %vm3390_vm1, %v3389_v51 }
 0x58a   :  { %3188 = vmatmul.mubr.msk.f32.vlgmr.msra.gmra.mrb[12].mxu0 %vm1063_vm2, %v1766_v49  ;;  %3193 = vmatmul.mubr.msk.f32.vlgmr.msra.gmra.mrb[18].mxu1 %vm1063_vm2, %v1767_v50 }
 0x60a   :  { %v1837_v55 = vpop.f32.mrb[6].mxu0 }
 0x60b   :  { %v3159_v25 = vpop.f32.mrb[7].mxu0 }
 0x60e   :  { %v1910_v45 = vpop.f32.mrb[12].mxu1 }
 0x60f   :  { %v1983_v52 = vpop.f32.mrb[8].mxu0  ;;  %v3164_v29 = vpop.f32.mrb[13].mxu1 }
 0x610   :  { %v2352_v59 = vcombine.low %v1837_v55, %v1983_v52  ;;  %v2353_v43 = vcombine.high %v1837_v55, %v1983_v52  ;;  %v3169_v36 = vpop.f32.mrb[9].mxu0  ;;  %v2656_v52 = vld [vmem:[%s3946_s3] sm:$0xff]  ;;  %v2657_v29 = vld [vmem:[%s3946_s3 + $0x8] sm:$0xff] }
 0x612   :  { %v2360_v10 = vrot.slane %v2352_v59, %v3526_v60  ;;  %v2367_v51 = vrot.slane %v2353_v43, %v3526_v60 }
 0x617   :  { %v2056_v12 = vpop.f32.mrb[14].mxu1 }
 0x618   :  { %v2368_v7 = vcombine.low %v1910_v45, %v2056_v12  ;;  %v2369_v8 = vcombine.high %v1910_v45, %v2056_v12  ;;  %v3174_v9 = vpop.f32.mrb[15].mxu1 }
 0x61a   :  { %v2376_v11 = vrot.slane %v2368_v7, %v3526_v60  ;;  %v2383_v14 = vrot.slane %v2369_v8, %v3526_v60  ;;  %v3244_v7 = vpack.c.bf16 %v2657_v29, %v2656_v52 }
 0x61c   :  { %v2384_v15 = vcombine.low %v2360_v10, %v2376_v11  ;;  %v2385_v16 = vcombine.high %v2360_v10, %v2376_v11  ;;  %v2400_v17 = vcombine.low %v2367_v51, %v2383_v14  ;;  %v2401_v18 = vcombine.high %v2367_v51, %v2383_v14  ;;  %3245 = vmatprep.subr.bf16.mxu0 %v3244_v7  ;;  %v2658_v11 = vld [vmem:[%s3946_s3 + $0x10] sm:$0xff]  ;;  %v2659_v14 = vld [vmem:[%s3946_s3 + $0x18] sm:$0xff] }
 0x61d   :  { %3247 = vmatpush3.bf16.msra.mxu0 %v3244_v7  ;;  %v2788_v7 = vld [vmem:[%s3947_s4 + $0x18] sm:$0xff] }
 0x61e   :  { %v2392_v19 = vrot.slane %v2384_v15, %v3537_v4  ;;  %v2399_v57 = vrot.slane %v2385_v16, %v3537_v4  ;;  %v2408_v20 = vrot.slane %v2400_v17, %v3537_v4  ;;  %v2415_v21 = vrot.slane %v2401_v18, %v3537_v4 }
 0x620   :  { %v2488_v22 = vcombine.low %v2392_v19, %v2399_v57  ;;  %v3033_v23 = vcombine.high %v2392_v19, %v2399_v57  ;;  %v2504_v24 = vcombine.low %v2408_v20, %v2415_v21  ;;  %v3034_v27 = vcombine.high %v2408_v20, %v2415_v21 }
 0x621   :  { %v3248_v19 = vpack.c.bf16 %v2659_v14, %v2658_v11  ;;  %v2882_v14 = vld [vmem:[%s3948_s5 + $0x18] sm:$0xff] }
 0x622   :  { %v2495_v30 = vrot.slane %v2488_v22, %v3526_v60  ;;  %v2503_v31 = vrot.slane %v3033_v23, %v3526_v60  ;;  %v2511_v32 = vrot.slane %v2504_v24, %v3526_v60  ;;  %v2519_v33 = vrot.slane %v3034_v27, %v3526_v60 }
 0x623   :  { %3249 = vmatprep.subr.bf16.mxu0 %v3248_v19 }
 0x624   :  { %v2520_v47 = vcombine.low %v2495_v30, %v2503_v31  ;;  %v2536_v34 = vcombine.low %v2511_v32, %v2519_v33  ;;  %v2521_v35 = vcombine.high %v2495_v30, %v2503_v31  ;;  %v2537_v46 = vcombine.high %v2511_v32, %v2519_v33  ;;  %3251 = vmatpush3.bf16.msra.mxu0 %v3248_v19 }
 0x626   :  { %v3806_v44 = vrot.slane %v2520_v47, %v3537_v4  ;;  %v3809_v2 = vrot.slane %v2536_v34, %v3537_v4  ;;  %v2535_v3 = vrot.slane %v2521_v35, %v3537_v4  ;;  %v2551_v37 = vrot.slane %v2537_v46, %v3537_v4 }
 0x628   :  { %v2553_v38 = vcombine.high %v3806_v44, %v3809_v2  ;;  %v2552_v39 = vcombine.low %v3806_v44, %v3809_v2  ;;  %v2554_v28 = vcombine.low %v2535_v3, %v2551_v37  ;;  %v2555_v48 = vcombine.high %v2535_v3, %v2551_v37  ;;  %v3862_v44 = vld [vmem:[%s3949_s6] sm:$0x3f] }
 0x62a   :  { %2626 = vrot.lane.b32.xlu0 %v2553_v38, %s3384_s16 }
 0x62e   :  { %2634 = vrot.lane.b32.xlu0 %v2554_v28, %s3394_s11 }
 0x632   :  { %2642 = vrot.lane.b32.xlu0 %v2555_v48, %s3395_s12 }
 0x659   :  { %v2129_v40 = vpop.f32.mrb[10].mxu0  ;;  %v2202_v41 = vpop.f32.mrb[16].mxu1 }
 0x65a   :  { %v3179_v42 = vpop.f32.mrb[11].mxu0  ;;  %v3184_v13 = vpop.f32.mrb[17].mxu1 }
 0x65b   :  { %v2662_v42 = vsub.s32 4, %v3473_v26 }
 0x65d   :  { %v2275_v53 = vpop.f32.mrb[12].mxu0  ;;  %v2348_v54 = vpop.f32.mrb[18].mxu1  ;;  %v2663_v2 = vrot.slane %v3862_v44, %v2662_v42 }
 0x65e   :  { %v2420_v56 = vcombine.low %v2129_v40, %v2275_v53  ;;  %v2421_v58 = vcombine.high %v2129_v40, %v2275_v53  ;;  %v2436_v61 = vcombine.low %v2202_v41, %v2348_v54  ;;  %v2437_v62 = vcombine.high %v2202_v41, %v2348_v54  ;;  %v3189_v63 = vpop.f32.mrb[13].mxu0  ;;  %v3194_v0 = vpop.f32.mrb[19].mxu1 }
 0x660   :  { %v2428_v1 = vrot.slane %v2420_v56, %v3526_v60  ;;  %v2435_v5 = vrot.slane %v2421_v58, %v3526_v60  ;;  %v2444_v6 = vrot.slane %v2436_v61, %v3526_v60  ;;  %v2451_v49 = vrot.slane %v2437_v62, %v3526_v60  ;;  %v3332_v56 = vld [vmem:[#allocation2 + $0x8] sm:$0xff]  ;;  %v3333_v61 = vld [vmem:[#allocation2] sm:$0xff] }
 0x662   :  { %v2452_v50 = vcombine.low %v2428_v1, %v2444_v6  ;;  %v2453_v55 = vcombine.high %v2428_v1, %v2444_v6  ;;  %v2468_v25 = vcombine.low %v2435_v5, %v2451_v49  ;;  %v2469_v45 = vcombine.high %v2435_v5, %v2451_v49 }
 0x664   :  { %v2460_v59 = vrot.slane %v2452_v50, %v3537_v4  ;;  %v2467_v43 = vrot.slane %v2453_v55, %v3537_v4  ;;  %v2476_v36 = vrot.slane %v2468_v25, %v3537_v4  ;;  %v2483_v12 = vrot.slane %v2469_v45, %v3537_v4 }
 0x666   :  { %v2556_v8 = vcombine.low %v2460_v59, %v2467_v43  ;;  %v3035_v9 = vcombine.high %v2460_v59, %v2467_v43  ;;  %v2572_v10 = vcombine.low %v2476_v36, %v2483_v12  ;;  %v3036_v51 = vcombine.high %v2476_v36, %v2483_v12  ;;  %v2785_v59 = vld [vmem:[%s3947_s4] sm:$0xff]  ;;  %v2786_v43 = vld [vmem:[%s3947_s4 + $0x8] sm:$0xff]  ;;  %v2787_v12 = vld [vmem:[%s3947_s4 + $0x10] sm:$0xff] }
 0x667   :  { %v3252_v36 = vpack.c.bf16 %v2786_v43, %v2785_v59 }
 0x668   :  { %v2563_v15 = vrot.slane %v2556_v8, %v3526_v60  ;;  %v2571_v16 = vrot.slane %v3035_v9, %v3526_v60  ;;  %v2579_v17 = vrot.slane %v2572_v10, %v3526_v60  ;;  %v2587_v18 = vrot.slane %v3036_v51, %v3526_v60  ;;  %v2879_v9 = vld [vmem:[%s3948_s5] sm:$0xff]  ;;  %v2880_v10 = vld [vmem:[%s3948_s5 + $0x8] sm:$0xff]  ;;  %v2881_v51 = vld [vmem:[%s3948_s5 + $0x10] sm:$0xff] }
 0x669   :  { %3253 = vmatprep.subr.bf16.mxu1 %v3252_v36  ;;  %v3256_v8 = vpack.c.bf16 %v2788_v7, %v2787_v12  ;;  %v3260_v11 = vpack.c.bf16 %v2880_v10, %v2879_v9 }
 0x66a   :  { %v2588_v57 = vcombine.low %v2563_v15, %v2571_v16  ;;  %v2604_v20 = vcombine.low %v2579_v17, %v2587_v18  ;;  %v2589_v21 = vcombine.high %v2563_v15, %v2571_v16  ;;  %v2605_v22 = vcombine.high %v2579_v17, %v2587_v18  ;;  %3255 = vmatpush3.bf16.msra.mxu1 %v3252_v36  ;;  %v2883_v16 = vld [vmem:[%s3948_s5 + $0x20] sm:$0xff]  ;;  %v2884_v17 = vld [vmem:[%s3948_s5 + $0x28] sm:$0xff] }
 0x66b   :  { %3257 = vmatprep.subr.bf16.mxu1 %v3256_v8  ;;  %v3264_v15 = vpack.c.bf16 %v2882_v14, %v2881_v51  ;;  %3261 = vmatprep.subr.bf16.mxu0 %v3260_v11  ;;  %v3268_v18 = vpack.c.bf16 %v2884_v17, %v2883_v16 }
 0x66c   :  { %v2596_v23 = vrot.slane %v2588_v57, %v3537_v4  ;;  %v2612_v24 = vrot.slane %v2604_v20, %v3537_v4  ;;  %v2603_v27 = vrot.slane %v2589_v21, %v3537_v4  ;;  %v2619_v30 = vrot.slane %v2605_v22, %v3537_v4 }
 0x66e   :  { %v2621_v31 = vcombine.high %v2596_v23, %v2612_v24  ;;  %v2620_v32 = vcombine.low %v2596_v23, %v2612_v24  ;;  %v2622_v33 = vcombine.low %v2603_v27, %v2619_v30  ;;  %v2623_v60 = vcombine.high %v2603_v27, %v2619_v30  ;;  %3259 = vmatpush3.bf16.msra.mxu1 %v3256_v8 }
 0x66f   :  { %v2775_v24 = vsub.s32 2, %v3473_v26  ;;  %v2781_v27 = vsub.s32 3, %v3473_v26 }
 0x670   :  { %2628 = vrot.lane.b32.xlu1 %v2621_v31, %s3384_s16 }
 0x671   :  { %v2776_v30 = vrot.slane %v3862_v44, %v2775_v24 }
 0x674   :  { %2636 = vrot.lane.b32.xlu1 %v2622_v33, %s3394_s11  ;;  %v2782_v33 = vrot.slane %v3862_v44, %v2781_v27 }
 0x678   :  { %2644 = vrot.lane.b32.xlu1 %v2623_v60, %s3395_s12 }
 0x69c   :  { %v2627_v47 = vpop.permute.xlu0 %2626 }
 0x69d   :  { %v2648_v4 = vsel %vm1063_vm2, %v2552_v39, %v2627_v47 }
 0x6a0   :  { %v2635_v34 = vpop.permute.xlu0 %2634 }
 0x6a1   :  { %v2651_v35 = vsel %vm2650_vm3, %v2648_v4, %v2635_v34 }
 0x6a4   :  { %v2643_v46 = vpop.permute.xlu0 %2642 }
 0x6a5   :  { %v2654_v3 = vsel %vm2653_vm4, %v2651_v35, %v2643_v46 }
 0x6a6   :  { %3203 = vmatprep.mubr.msk.f32.mxu0 %vm47_vm0, %v2654_v3  ;;  %v2885_v3 = vld [vmem:[%s3948_s5 + $0x30] sm:$0xff] }
 0x6e2   :  { %v2629_v37 = vpop.permute.xlu1 %2628 }
 0x6e3   :  { %v2649_v28 = vsel %vm1063_vm2, %v2620_v32, %v2629_v37  ;;  %v2886_v37 = vld [vmem:[%s3948_s5 + $0x38] sm:$0xff]  ;;  %s3396_s5 = smov [#allocation5]  }
 0x6e4   :  { %s2982_s6 = sshll.u32 %s3396_s5, 4  ;;  %s2983_s6 = int_to_ptr.vmem [resolvable:$true] %s2982_s6 }
 0x6e5   :  { %p3361_p9 = scmp.lt.s32.totalorder %s2983_s6, %s2983_s6 }
 0x6e6   :  { %v2637_v38 = vpop.permute.xlu1 %2636 }
 0x6e7   :  { %v2652_v48 = vsel %vm2650_vm3, %v2649_v28, %v2637_v38  ;;  %v3272_v38 = vpack.c.bf16 %v2886_v37, %v2885_v3  ;;  %v3039_v28 = vld [vmem:[%s3950_s7] ss:$0 sm:$0xff]  ;;  %s3356_s7 = scalar_lea.vmem %s2983_s6, 256 }
 0x6e8   :  { %p3357_p8 = scmp.ne.s32.totalorder %s2983_s6, %s3356_s7  ;;  %p3362_p10 = scmp.lt.s32.totalorder %s3356_s7, %s3356_s7 }
 0x6ea   :  { %v2645_v40 = vpop.permute.xlu1 %2644  ;;  %p3363_p11 = por %p3362_p10, %p3361_p9 }
 0x6eb   :  { %v2655_v41 = vsel %vm2653_vm4, %v2652_v48, %v2645_v40 }
 0x6ec   :  { %3204 = vmatmul.mubr.msk.f32.vlgmr.msra.gmra.mrb[14].mxu0 %vm47_vm0, %v2655_v41  ;;  %p3364_p12 = pnand %p3363_p11, %p3357_p8 }
 0x6ed   :  { %3263 = vmatpush3.bf16.msra.mxu0 %v3260_v11 }
 0x6ee   :  { %3265 = vmatprep.subr.bf16.mxu0 %v3264_v15 }
 0x6f1   :  { %3267 = vmatpush3.bf16.msra.mxu0 %v3264_v15 }
 0x6f2   :  { %3269 = vmatprep.subr.bf16.mxu0 %v3268_v18 }
 0x6f5   :  { %3271 = vmatpush3.bf16.msra.mxu0 %v3268_v18 }
 0x6f6   :  { %3273 = vmatprep.subr.bf16.mxu0 %v3272_v38 }
 0x6f9   :  { %3275 = vmatpush3.bf16.msra.mxu0 %v3272_v38 }
 0x7bf   :  { %v3205_v39 = vpop.f32.mrb[14].mxu0 }
 0x7c0   :  { %v2742_v13 = vadd.f32 %v3205_v39, %v2663_v2  ;;  %v2736_v53 = vpop.f32.mrb[15].mxu0 }
 0x7c1   :  { %v2737_v54 = vadd.f32 %v2736_v53, %v2663_v2 }
 0x7c2   :  { %v3865_v58 = vadd.f32 %v3332_v56, %v2742_v13  ;;  %v2889_v13 = vsub.s32 5, %v3473_v26 }
 0x7c3   :  { %v3867_v62 = vadd.f32 %v3333_v61, %v2737_v54 }
 0x7c4   :  { %v2750_v63 = vsel %vm47_vm0, %v3865_v58, 0.0  ;;  %v2890_v53 = vrot.slane %v3862_v44, %v2889_v13 }
 0x7c5   :  { %2751 = vadd.xlane.f32.xlu1 %v2750_v63  ;;  %v2747_v0 = vsel %vm47_vm0, %v3867_v62, 0.0 }
 0x7c6   :  { %2748 = vadd.xlane.f32.xlu0 %v2747_v0 }
 0x852   :  { %v2752_v1 = vpop.xlane.xlu1 %2751 }
 0x853   :  { %v2754_v5 = vmul.f32 0.03125, %v2752_v1  ;;  %v2749_v6 = vpop.xlane.xlu0 %2748 }
 0x854   :  { %v2753_v49 = vmul.f32 0.03125, %v2749_v6 }
 0x855   :  { %v2756_v50 = vsub.f32 %v3865_v58, %v2754_v5 }
 0x856   :  { %v2755_v55 = vsub.f32 %v3867_v62, %v2753_v49 }
 0x857   :  { %v2758_v52 = vmul.f32 %v2756_v50, %v2756_v50 }
 0x858   :  { %v2757_v25 = vmul.f32 %v2755_v55, %v2755_v55 }
 0x859   :  { %v2762_v29 = vsel %vm47_vm0, %v2758_v52, 0.0 }
 0x85a   :  { %v2759_v45 = vsel %vm47_vm0, %v2757_v25, 0.0 }
 0x85b   :  { %2760 = vadd.xlane.f32.xlu0 %v2759_v45 }
 0x85f   :  { %2763 = vadd.xlane.f32.xlu0 %v2762_v29 }
 0x8e8   :  { %v2761_v19 = vpop.xlane.xlu0 %2760 }
 0x8e9   :  { %v2765_v57 = vmul.f32 0.03125, %v2761_v19 }
 0x8eb   :  { %v2767_v20 = vadd.f32 1e-12, %v2765_v57 }
 0x8ec   :  { %v2764_v21 = vpop.xlane.xlu0 %2763 }
 0x8ed   :  { %3327 = vrsqrt.f32 %v2767_v20  ;;  %v2766_v22 = vmul.f32 0.03125, %v2764_v21 }
 0x8ef   :  { %v2768_v23 = vadd.f32 1e-12, %v2766_v22 }
 0x8f1   :  { %3329 = vrsqrt.f32 %v2768_v23 }
 0x8f7   :  { %v3328_v31 = vpop.eup %3327 }
 0x8f8   :  { %v2771_v32 = vmul.f32 %v3328_v31, %v2755_v55 }
 0x8fa   :  { %v2777_v60 = vmul.f32 %v2776_v30, %v2771_v32 }
 0x8fb   :  { %v3330_v47 = vpop.eup %3329 }
 0x8fc   :  { %v2772_v34 = vmul.f32 %v3330_v47, %v2756_v50  ;;  %v2783_v4 = vadd.f32 %v2782_v33, %v2777_v60 }
 0x8fe   :  { %v2778_v35 = vmul.f32 %v2776_v30, %v2772_v34  ;;  %3214 = vmatprep.mubr.msk.f32.mxu1 %vm47_vm0, %v2783_v4 }
 0x900   :  { %v2784_v46 = vadd.f32 %v2782_v33, %v2778_v35 }
 0x902   :  { %3215 = vmatmul.mubr.msk.f32.vlgmr.msra.gmra.mrb[20].mxu1 %vm47_vm0, %v2784_v46 }
 0x9d5   :  { %v3216_v48 = vpop.f32.mrb[20].mxu1 }
 0x9d6   :  { %v2874_v40 = vadd.f32 %v3216_v48, %v3039_v28  ;;  %v2868_v41 = vpop.f32.mrb[21].mxu1 }
 0x9d7   :  { %v2869_v42 = vadd.f32 %v3039_v28, %v2868_v41 }
 0x9d8   :  { %v2878_v39 = vmax.f32 %v2874_v40, 0.0 }
 0x9d9   :  { %v2877_v2 = vmax.f32 %v2869_v42, 0.0 }
 0x9db   :  { %3233 = vmatprep.mubr.msk.f32.mxu0 %vm2891_vm5, %v2877_v2 }
 0x9dc   :  { %3234 = vmatmul.mubr.msk.f32.vlgmr.msra.gmra.mrb[16].mxu0 %vm2891_vm5, %v2878_v39 }
 0xaaf   :  { %v3235_v54 = vpop.f32.mrb[16].mxu0 }
 0xab0   :  { %v2970_v56 = vadd.f32 %v3235_v54, %v2890_v53  ;;  %v2964_v61 = vpop.f32.mrb[17].mxu0 }
 0xab1   :  { %v2965_v63 = vadd.f32 %v2964_v61, %v2890_v53 }
 0xab2   :  { %v2974_v0 = vadd.f32 %v2970_v56, %v3865_v58 }
 0xab3   :  { %v2973_v1 = vadd.f32 %v2965_v63, %v3867_v62 }
 0xab4   :  { %2976 = vst.msk [vmem:[#allocation5 + $0x8] sm:$0xff] %vm47_vm0, %v2974_v0 }
 0xab5   :  { %2975 = vst.msk [vmem:[#allocation5] sm:$0xff] %vm47_vm0, %v2973_v1 }
 0xab6   :  { %3367 = shalt.err (!%p3364_p12)
}
 0xab7   :  { %s3368_s25 = scalar_lea.hbm %s3951_s8, 256 }
 0xab8   :  { %p3369_p13 = scmp.ne.s32.totalorder %s3951_s8, %s3368_s25  ;;  %p3372_p0 = scmp.lt.u32.totalorder %s3368_s25, %s3951_s8 }
 0xaba   :  { %p3374_p1 = pnand %p3372_p0, %p3369_p13 }
 0xabc   :  { %3377 = shalt.err (!%p3374_p1)
}
 0xabd   :  { %2988 = dma.vmem_to_hbm [thread:$0]  %s2983_s6, 256, %s3951_s8, [#allocation4], %s3383_s15, %s3383_s15, %s3384_s16  }
 0xabe   :  { %3380 = dma.done.wait [#allocation4], 256  }
 0xabf   :  { %3381 = vsyncadd [#allocation4], 4294967040 }
 0xac0   :  { %2992 = vsyncpa [#allocation3], 1 }
 0xac1   :  { %2993 = vsyncpa [#allocation4], 1 }

</bundles_post_ra>
